<compile_context>
chip_gen: v7x
topology: tpu7x:2x2x1
jax: 0.10.0
libtpu: 0.0.40
codegen_flags: <defaults>
</compile_context>

<pallas_src>
import functools

import jax
import jax.numpy as jnp
from jax.experimental import pallas as pl
from jax.experimental.pallas import tpu as pltpu


NEG_SLOPE = 0.01  # F.leaky_relu default


def _leaky(x):
    return jnp.where(x >= 0, x, NEG_SLOPE * x)


def _round_up(n, m):
    return ((n + m - 1) // m) * m


def dqn_lstm_kernel(x_ref, h0_ref, c0_ref,
                    w1_ref, b1_ref,
                    wih_ref, whh_ref, bcat_ref,
                    w3_ref, b3_ref,
                    out_ref, hxo_ref, cxo_ref):
    B, Hh = h0_ref.shape          # Hh = H (compact, 4H<=128) or H padded to 128k
    T = out_ref.shape[0]

    # ---- Phase 1 (off the recurrent path) -----------------------------------
    # fc1 + leaky_relu for ALL timesteps as one matmul, plus the x-dependent
    # half of the LSTM gate pre-activations (a1 @ W_ih^T + b) as one matmul.
    a1 = _leaky(jnp.dot(x_ref[...], w1_ref[...],
                        preferred_element_type=jnp.float32) + b1_ref[...])
    gx = jnp.dot(a1, wih_ref[...],
                 preferred_element_type=jnp.float32) + bcat_ref[...]   # (T*B, 4Hh)

    # Per-step slices of gx depend only on gx (not on h/c), so the scheduler
    # hoists them off the serial chain.
    gx_t = [gx[t * B:(t + 1) * B, :] for t in range(T)]

    whh = whh_ref[...]            # keep the recurrent weight load out of the loop
    h = h0_ref[...]               # (B, Hh)
    c = c0_ref[...]

    # ---- Phase 2: serial LSTM recurrence ------------------------------------
    # Fully unrolled (T is static & small).  Per step: ONE MXU matmul + ONE EUP
    # tanh over the packed 4-gate block.  sigmoid is folded into tanh: the
    # wrapper pre-scaled the i/f/o gate weights & biases by 0.5, so
    # sigmoid(x) == 0.5 * tanh_gate + 0.5 here.  h_t is carried in registers.
    # TODO(synk): if T grows beyond a few dozen, switch to lax.fori_loop with
    # modest unroll (full unroll blows instruction memory / compile time).
    hs = []
    for t in range(T):
        gates = gx_t[t] + jnp.dot(h, whh, preferred_element_type=jnp.float32)
        tg = jnp.tanh(gates)                       # single EUP block, all 4 gates
        i_g = 0.5 * tg[:, 0 * Hh:1 * Hh] + 0.5
        f_g = 0.5 * tg[:, 1 * Hh:2 * Hh] + 0.5
        g_g = tg[:, 2 * Hh:3 * Hh]
        o_g = 0.5 * tg[:, 3 * Hh:4 * Hh] + 0.5
        c = f_g * c + i_g * g_g
        h = o_g * jnp.tanh(c)
        hs.append(h)

    # ---- Phase 3 (off the recurrent path): fc3 + leaky_relu epilogue --------
    # Each timestep's fc3 only depends on its own h_t, so these matmuls overlap
    # with later recurrence steps.  Output blocks are tile-aligned and 128-lane
    # dense (Ap is padded to 128 in the wrapper).
    w3 = w3_ref[...]
    b3 = b3_ref[...]
    for t in range(T):
        out_ref[t] = _leaky(jnp.dot(hs[t], w3,
                                    preferred_element_type=jnp.float32) + b3)
    hxo_ref[...] = h
    cxo_ref[...] = c


def prepare_params(params):
    """One-time weight preprocessing (transpose / pad / gate-pack / bias fuse).

    Call once at init.  Keeping this out of dqn_lstm_forward removes ~20
    transpose/update-slice HLO ops from every inference call.
    """
    w1, b1, w_ih, w_hh, b_ih, b_hh, w3, b3 = [jnp.asarray(p, jnp.float32)
                                              for p in params]
    H, S = w1.shape
    A = w3.shape[0]
    # Compact gate packing when all four gates fit in one 128-lane block
    # (one MXU pass + one EUP tanh per recurrent step); otherwise pad the
    # hidden size to a 128-lane multiple so gate slices stay vreg-aligned.
    Hh = H if 4 * H <= 128 else _round_up(H, 128)
    Ap = _round_up(A, 128)                     # lane-dense epilogue output
    # sigmoid(x) = 0.5*tanh(x/2) + 0.5  =>  scale i/f/o gate weights+bias by 0.5.
    gate_scale = (0.5, 0.5, 1.0, 0.5)          # PyTorch LSTM gate order: i,f,g,o

    w1p = jnp.zeros((S, Hh), jnp.float32).at[:, :H].set(w1.T)
    b1p = jnp.zeros((1, Hh), jnp.float32).at[0, :H].set(b1)

    def pack_gates(w):                          # w: (4H, H), PyTorch layout
        wt = w.reshape(4, H, H).transpose(0, 2, 1)        # (gate, in, out)
        out = jnp.zeros((Hh, 4 * Hh), jnp.float32)
        for k in range(4):
            out = out.at[:H, k * Hh:k * Hh + H].set(gate_scale[k] * wt[k])
        return out

    wih_p = pack_gates(w_ih)
    whh_p = pack_gates(w_hh)

    bsum = b_ih + b_hh                          # fused LSTM biases
    bcat = jnp.zeros((1, 4 * Hh), jnp.float32)
    for k in range(4):
        bcat = bcat.at[0, k * Hh:k * Hh + H].set(
            gate_scale[k] * bsum[k * H:(k + 1) * H])

    w3p = jnp.zeros((Hh, Ap), jnp.float32).at[:H, :A].set(w3.T)
    b3p = jnp.zeros((1, Ap), jnp.float32).at[0, :A].set(b3)

    return (w1p, b1p, wih_p, whh_p, bcat, w3p, b3p)


@functools.partial(jax.jit, static_argnames=("action_size",))
def dqn_lstm_forward(x, hx, cx, padded, *, action_size):
    """x: (B,T,S) f32; hx, cx: (1,B,H). Returns (out (B,T,A), hx, cx)."""
    w1p, b1p, wih_p, whh_p, bcat, w3p, b3p = padded
    B, T, S = x.shape
    H = hx.shape[2]
    Hh = w1p.shape[1]
    GW = wih_p.shape[1]
    Ap = w3p.shape[1]
    A = action_size

    # Time-major rows (row index = t*B + b) so fc1 / gate matmuls are bulk.
    x2d = jnp.transpose(x, (1, 0, 2)).reshape(T * B, S)
    # Padded initial state (padded lanes are 0 and provably stay 0).
    h0 = jnp.zeros((B, Hh), jnp.float32).at[:, :H].set(hx[0])
    c0 = jnp.zeros((B, Hh), jnp.float32).at[:, :H].set(cx[0])

    vmem = pl.BlockSpec(memory_space=pltpu.MemorySpace.VMEM)
    flops = 2 * T * B * (S * Hh + Hh * GW + Hh * GW + Hh * Ap)
    transcendentals = T * B * (GW + Hh)
    nbytes = 4 * (x2d.size + h0.size + c0.size
                  + sum(p.size for p in padded)
                  + T * B * Ap + 2 * B * Hh)

    out3, h_n, c_n = pl.pallas_call(
        dqn_lstm_kernel,
        out_shape=(
            jax.ShapeDtypeStruct((T, B, Ap), jnp.float32),
            jax.ShapeDtypeStruct((B, Hh), jnp.float32),
            jax.ShapeDtypeStruct((B, Hh), jnp.float32),
        ),
        # No grid: single invocation, everything VMEM-resident (~1 MB).
        in_specs=[vmem] * 10,
        out_specs=(vmem, vmem, vmem),
        cost_estimate=pl.CostEstimate(flops=flops,
                                      transcendentals=transcendentals,
                                      bytes_accessed=nbytes),
    )(x2d, h0, c0, w1p, b1p, wih_p, whh_p, bcat, w3p, b3p)

    out = jnp.transpose(out3[:, :, :A], (1, 0, 2))      # back to (B, T, A)
    return out, h_n[:, :H][None], c_n[:, :H][None]


def ref_forward(x, hx, cx, params):
    """Pure-JAX reference mirroring PyTorch semantics."""
    (w1, b1, w_ih, w_hh, b_ih, b_hh, w3, b3) = params
    B, T, S = x.shape
    H = w1.shape[0]
    a1 = _leaky(jnp.einsum("bts,hs->bth", x, w1) + b1)
    h, c = hx[0], cx[0]
    outs = []
    for t in range(T):
        gates = a1[:, t] @ w_ih.T + b_ih + h @ w_hh.T + b_hh
        i = jax.nn.sigmoid(gates[:, 0 * H:1 * H])
        f = jax.nn.sigmoid(gates[:, 1 * H:2 * H])
        g = jnp.tanh(gates[:, 2 * H:3 * H])
        o = jax.nn.sigmoid(gates[:, 3 * H:4 * H])
        c = f * c + i * g
        h = o * jnp.tanh(c)
        outs.append(h)
    out = jnp.stack(outs, axis=1)                      # (B, T, H)
    y = _leaky(jnp.einsum("bth,ah->bta", out, w3) + b3)
    return y, h[None], c[None]


def init_params(key, state_size, action_size, hidden_size):
    ks = jax.random.split(key, 8)
    scale = 0.1
    w1 = scale * jax.random.normal(ks[0], (hidden_size, state_size), jnp.float32)
    b1 = scale * jax.random.normal(ks[1], (hidden_size,), jnp.float32)
    w_ih = scale * jax.random.normal(ks[2], (4 * hidden_size, hidden_size), jnp.float32)
    w_hh = scale * jax.random.normal(ks[3], (4 * hidden_size, hidden_size), jnp.float32)
    b_ih = scale * jax.random.normal(ks[4], (4 * hidden_size,), jnp.float32)
    b_hh = scale * jax.random.normal(ks[5], (4 * hidden_size,), jnp.float32)
    w3 = scale * jax.random.normal(ks[6], (action_size, hidden_size), jnp.float32)
    b3 = scale * jax.random.normal(ks[7], (action_size,), jnp.float32)
    return (w1, b1, w_ih, w_hh, b_ih, b_hh, w3, b3)


def _run_config(seed, B, T, S, H, A):
    key = jax.random.PRNGKey(seed)
    kx, kh, kc, kp = jax.random.split(key, 4)
    x = jax.random.normal(kx, (B, T, S), jnp.float32)
    hx = jax.random.normal(kh, (1, B, H), jnp.float32)
    cx = jax.random.normal(kc, (1, B, H), jnp.float32)
    params = init_params(kp, S, A, H)

    padded = prepare_params(params)                      # one-time, off jit path
    out, h_out, c_out = dqn_lstm_forward(x, hx, cx, padded, action_size=A)
    jax.block_until_ready((out, h_out, c_out))

    out_r, h_r, c_r = ref_forward(x, hx, cx, params)
    assert jnp.allclose(out, out_r, atol=3e-5, rtol=3e-5)
    assert jnp.allclose(h_out, h_r, atol=3e-5, rtol=3e-5)
    assert jnp.allclose(c_out, c_r, atol=3e-5, rtol=3e-5)


if __name__ == "__main__":
    # Compact-gate path (4H <= 128): H=32.
    _run_config(seed=0, B=2, T=8, S=16, H=32, A=4)
    # General padded path (module default hidden_size=100, 4H > 128).
    _run_config(seed=0, B=2, T=5, S=16, H=100, A=4)
    print("KERNEL_OK")
</pallas_src>

<mosaic_0001>
module attributes {stable_mosaic.version = 11 : i64} {
  func.func @dqn_lstm_kernel(%arg0: memref<16x16xf32, #tpu.memory_space<vmem>>, %arg1: memref<2x32xf32, #tpu.memory_space<vmem>>, %arg2: memref<2x32xf32, #tpu.memory_space<vmem>>, %arg3: memref<16x32xf32, #tpu.memory_space<vmem>>, %arg4: memref<1x32xf32, #tpu.memory_space<vmem>>, %arg5: memref<32x128xf32, #tpu.memory_space<vmem>>, %arg6: memref<32x128xf32, #tpu.memory_space<vmem>>, %arg7: memref<1x128xf32, #tpu.memory_space<vmem>>, %arg8: memref<32x128xf32, #tpu.memory_space<vmem>>, %arg9: memref<1x128xf32, #tpu.memory_space<vmem>>, %arg10: memref<8x2x128xf32, #tpu.memory_space<vmem>>, %arg11: memref<2x32xf32, #tpu.memory_space<vmem>>, %arg12: memref<2x32xf32, #tpu.memory_space<vmem>>) attributes {dimension_semantics = [], scalar_prefetch = 0 : i64, scratch_operands = 0 : i64, tpu.core_type = #tpu.core_type<tc>} {
    %c0 = arith.constant 0 : index
    %c0_0 = arith.constant 0 : index
    %0 = vector.load %arg0[%c0, %c0_0] : memref<16x16xf32, #tpu.memory_space<vmem>>, vector<16x16xf32>
    %c0_1 = arith.constant 0 : index
    %c0_2 = arith.constant 0 : index
    %1 = vector.load %arg3[%c0_1, %c0_2] : memref<16x32xf32, #tpu.memory_space<vmem>>, vector<16x32xf32>
    %cst = arith.constant dense<0.000000e+00> : vector<16x32xf32>
    %2 = tpu.matmul %0, %1, %cst {dimension_numbers = #tpu.dot_dimension_numbers<[1], [0], [0], [1], [0, 0, 1, 1], [], []>} : vector<16x16xf32>, vector<16x32xf32>, vector<16x32xf32> -> vector<16x32xf32>
    %c0_3 = arith.constant 0 : index
    %c0_4 = arith.constant 0 : index
    %3 = vector.load %arg4[%c0_3, %c0_4] : memref<1x32xf32, #tpu.memory_space<vmem>>, vector<1x32xf32>
    %4 = vector.broadcast %3 : vector<1x32xf32> to vector<16x32xf32>
    %5 = arith.addf %2, %4 : vector<16x32xf32>
    %cst_5 = arith.constant 0.000000e+00 : f32
    %6 = vector.broadcast %cst_5 : f32 to vector<16x32xf32>
    %7 = arith.cmpf oge, %5, %6 : vector<16x32xf32>
    %cst_6 = arith.constant 0.00999999977 : f32
    %8 = vector.broadcast %cst_6 : f32 to vector<16x32xf32>
    %9 = arith.mulf %8, %5 : vector<16x32xf32>
    %10 = arith.select %7, %5, %9 : vector<16x32xi1>, vector<16x32xf32>
    %c0_7 = arith.constant 0 : index
    %c0_8 = arith.constant 0 : index
    %11 = vector.load %arg5[%c0_7, %c0_8] : memref<32x128xf32, #tpu.memory_space<vmem>>, vector<32x128xf32>
    %cst_9 = arith.constant dense<0.000000e+00> : vector<16x128xf32>
    %12 = tpu.matmul %10, %11, %cst_9 {dimension_numbers = #tpu.dot_dimension_numbers<[1], [0], [0], [1], [0, 0, 1, 1], [], []>} : vector<16x32xf32>, vector<32x128xf32>, vector<16x128xf32> -> vector<16x128xf32>
    %c0_10 = arith.constant 0 : index
    %c0_11 = arith.constant 0 : index
    %13 = vector.load %arg7[%c0_10, %c0_11] : memref<1x128xf32, #tpu.memory_space<vmem>>, vector<1x128xf32>
    %14 = vector.broadcast %13 : vector<1x128xf32> to vector<16x128xf32>
    %15 = arith.addf %12, %14 : vector<16x128xf32>
    %16 = vector.extract_strided_slice %15 {offsets = [0, 0], sizes = [2, 128], strides = [1, 1]} : vector<16x128xf32> to vector<2x128xf32>
    %17 = vector.extract_strided_slice %15 {offsets = [2, 0], sizes = [2, 128], strides = [1, 1]} : vector<16x128xf32> to vector<2x128xf32>
    %18 = vector.extract_strided_slice %15 {offsets = [4, 0], sizes = [2, 128], strides = [1, 1]} : vector<16x128xf32> to vector<2x128xf32>
    %19 = vector.extract_strided_slice %15 {offsets = [6, 0], sizes = [2, 128], strides = [1, 1]} : vector<16x128xf32> to vector<2x128xf32>
    %20 = vector.extract_strided_slice %15 {offsets = [8, 0], sizes = [2, 128], strides = [1, 1]} : vector<16x128xf32> to vector<2x128xf32>
    %21 = vector.extract_strided_slice %15 {offsets = [10, 0], sizes = [2, 128], strides = [1, 1]} : vector<16x128xf32> to vector<2x128xf32>
    %22 = vector.extract_strided_slice %15 {offsets = [12, 0], sizes = [2, 128], strides = [1, 1]} : vector<16x128xf32> to vector<2x128xf32>
    %23 = vector.extract_strided_slice %15 {offsets = [14, 0], sizes = [2, 128], strides = [1, 1]} : vector<16x128xf32> to vector<2x128xf32>
    %c0_12 = arith.constant 0 : index
    %c0_13 = arith.constant 0 : index
    %24 = vector.load %arg6[%c0_12, %c0_13] : memref<32x128xf32, #tpu.memory_space<vmem>>, vector<32x128xf32>
    %c0_14 = arith.constant 0 : index
    %c0_15 = arith.constant 0 : index
    %25 = vector.load %arg1[%c0_14, %c0_15] : memref<2x32xf32, #tpu.memory_space<vmem>>, vector<2x32xf32>
    %c0_16 = arith.constant 0 : index
    %c0_17 = arith.constant 0 : index
    %26 = vector.load %arg2[%c0_16, %c0_17] : memref<2x32xf32, #tpu.memory_space<vmem>>, vector<2x32xf32>
    %cst_18 = arith.constant dense<0.000000e+00> : vector<2x128xf32>
    %27 = tpu.matmul %25, %24, %cst_18 {dimension_numbers = #tpu.dot_dimension_numbers<[1], [0], [0], [1], [0, 0, 1, 1], [], []>} : vector<2x32xf32>, vector<32x128xf32>, vector<2x128xf32> -> vector<2x128xf32>
    %28 = arith.addf %16, %27 : vector<2x128xf32>
    %29 = math.tanh %28 : vector<2x128xf32>
    %30 = vector.extract_strided_slice %29 {offsets = [0, 0], sizes = [2, 32], strides = [1, 1]} : vector<2x128xf32> to vector<2x32xf32>
    %cst_19 = arith.constant 5.000000e-01 : f32
    %31 = vector.broadcast %cst_19 : f32 to vector<2x32xf32>
    %32 = arith.mulf %31, %30 : vector<2x32xf32>
    %cst_20 = arith.constant 5.000000e-01 : f32
    %33 = vector.broadcast %cst_20 : f32 to vector<2x32xf32>
    %34 = arith.addf %32, %33 : vector<2x32xf32>
    %35 = vector.extract_strided_slice %29 {offsets = [0, 32], sizes = [2, 32], strides = [1, 1]} : vector<2x128xf32> to vector<2x32xf32>
    %cst_21 = arith.constant 5.000000e-01 : f32
    %36 = vector.broadcast %cst_21 : f32 to vector<2x32xf32>
    %37 = arith.mulf %36, %35 : vector<2x32xf32>
    %cst_22 = arith.constant 5.000000e-01 : f32
    %38 = vector.broadcast %cst_22 : f32 to vector<2x32xf32>
    %39 = arith.addf %37, %38 : vector<2x32xf32>
    %40 = vector.extract_strided_slice %29 {offsets = [0, 64], sizes = [2, 32], strides = [1, 1]} : vector<2x128xf32> to vector<2x32xf32>
    %41 = vector.extract_strided_slice %29 {offsets = [0, 96], sizes = [2, 32], strides = [1, 1]} : vector<2x128xf32> to vector<2x32xf32>
    %cst_23 = arith.constant 5.000000e-01 : f32
    %42 = vector.broadcast %cst_23 : f32 to vector<2x32xf32>
    %43 = arith.mulf %42, %41 : vector<2x32xf32>
    %cst_24 = arith.constant 5.000000e-01 : f32
    %44 = vector.broadcast %cst_24 : f32 to vector<2x32xf32>
    %45 = arith.addf %43, %44 : vector<2x32xf32>
    %46 = arith.mulf %39, %26 : vector<2x32xf32>
    %47 = arith.mulf %34, %40 : vector<2x32xf32>
    %48 = arith.addf %46, %47 : vector<2x32xf32>
    %49 = math.tanh %48 : vector<2x32xf32>
    %50 = arith.mulf %45, %49 : vector<2x32xf32>
    %cst_25 = arith.constant dense<0.000000e+00> : vector<2x128xf32>
    %51 = tpu.matmul %50, %24, %cst_25 {dimension_numbers = #tpu.dot_dimension_numbers<[1], [0], [0], [1], [0, 0, 1, 1], [], []>} : vector<2x32xf32>, vector<32x128xf32>, vector<2x128xf32> -> vector<2x128xf32>
    %52 = arith.addf %17, %51 : vector<2x128xf32>
    %53 = math.tanh %52 : vector<2x128xf32>
    %54 = vector.extract_strided_slice %53 {offsets = [0, 0], sizes = [2, 32], strides = [1, 1]} : vector<2x128xf32> to vector<2x32xf32>
    %cst_26 = arith.constant 5.000000e-01 : f32
    %55 = vector.broadcast %cst_26 : f32 to vector<2x32xf32>
    %56 = arith.mulf %55, %54 : vector<2x32xf32>
    %cst_27 = arith.constant 5.000000e-01 : f32
    %57 = vector.broadcast %cst_27 : f32 to vector<2x32xf32>
    %58 = arith.addf %56, %57 : vector<2x32xf32>
    %59 = vector.extract_strided_slice %53 {offsets = [0, 32], sizes = [2, 32], strides = [1, 1]} : vector<2x128xf32> to vector<2x32xf32>
    %cst_28 = arith.constant 5.000000e-01 : f32
    %60 = vector.broadcast %cst_28 : f32 to vector<2x32xf32>
    %61 = arith.mulf %60, %59 : vector<2x32xf32>
    %cst_29 = arith.constant 5.000000e-01 : f32
    %62 = vector.broadcast %cst_29 : f32 to vector<2x32xf32>
    %63 = arith.addf %61, %62 : vector<2x32xf32>
    %64 = vector.extract_strided_slice %53 {offsets = [0, 64], sizes = [2, 32], strides = [1, 1]} : vector<2x128xf32> to vector<2x32xf32>
    %65 = vector.extract_strided_slice %53 {offsets = [0, 96], sizes = [2, 32], strides = [1, 1]} : vector<2x128xf32> to vector<2x32xf32>
    %cst_30 = arith.constant 5.000000e-01 : f32
    %66 = vector.broadcast %cst_30 : f32 to vector<2x32xf32>
    %67 = arith.mulf %66, %65 : vector<2x32xf32>
    %cst_31 = arith.constant 5.000000e-01 : f32
    %68 = vector.broadcast %cst_31 : f32 to vector<2x32xf32>
    %69 = arith.addf %67, %68 : vector<2x32xf32>
    %70 = arith.mulf %63, %48 : vector<2x32xf32>
    %71 = arith.mulf %58, %64 : vector<2x32xf32>
    %72 = arith.addf %70, %71 : vector<2x32xf32>
    %73 = math.tanh %72 : vector<2x32xf32>
    %74 = arith.mulf %69, %73 : vector<2x32xf32>
    %cst_32 = arith.constant dense<0.000000e+00> : vector<2x128xf32>
    %75 = tpu.matmul %74, %24, %cst_32 {dimension_numbers = #tpu.dot_dimension_numbers<[1], [0], [0], [1], [0, 0, 1, 1], [], []>} : vector<2x32xf32>, vector<32x128xf32>, vector<2x128xf32> -> vector<2x128xf32>
    %76 = arith.addf %18, %75 : vector<2x128xf32>
    %77 = math.tanh %76 : vector<2x128xf32>
    %78 = vector.extract_strided_slice %77 {offsets = [0, 0], sizes = [2, 32], strides = [1, 1]} : vector<2x128xf32> to vector<2x32xf32>
    %cst_33 = arith.constant 5.000000e-01 : f32
    %79 = vector.broadcast %cst_33 : f32 to vector<2x32xf32>
    %80 = arith.mulf %79, %78 : vector<2x32xf32>
    %cst_34 = arith.constant 5.000000e-01 : f32
    %81 = vector.broadcast %cst_34 : f32 to vector<2x32xf32>
    %82 = arith.addf %80, %81 : vector<2x32xf32>
    %83 = vector.extract_strided_slice %77 {offsets = [0, 32], sizes = [2, 32], strides = [1, 1]} : vector<2x128xf32> to vector<2x32xf32>
    %cst_35 = arith.constant 5.000000e-01 : f32
    %84 = vector.broadcast %cst_35 : f32 to vector<2x32xf32>
    %85 = arith.mulf %84, %83 : vector<2x32xf32>
    %cst_36 = arith.constant 5.000000e-01 : f32
    %86 = vector.broadcast %cst_36 : f32 to vector<2x32xf32>
    %87 = arith.addf %85, %86 : vector<2x32xf32>
    %88 = vector.extract_strided_slice %77 {offsets = [0, 64], sizes = [2, 32], strides = [1, 1]} : vector<2x128xf32> to vector<2x32xf32>
    %89 = vector.extract_strided_slice %77 {offsets = [0, 96], sizes = [2, 32], strides = [1, 1]} : vector<2x128xf32> to vector<2x32xf32>
    %cst_37 = arith.constant 5.000000e-01 : f32
    %90 = vector.broadcast %cst_37 : f32 to vector<2x32xf32>
    %91 = arith.mulf %90, %89 : vector<2x32xf32>
    %cst_38 = arith.constant 5.000000e-01 : f32
    %92 = vector.broadcast %cst_38 : f32 to vector<2x32xf32>
    %93 = arith.addf %91, %92 : vector<2x32xf32>
    %94 = arith.mulf %87, %72 : vector<2x32xf32>
    %95 = arith.mulf %82, %88 : vector<2x32xf32>
    %96 = arith.addf %94, %95 : vector<2x32xf32>
    %97 = math.tanh %96 : vector<2x32xf32>
    %98 = arith.mulf %93, %97 : vector<2x32xf32>
    %cst_39 = arith.constant dense<0.000000e+00> : vector<2x128xf32>
    %99 = tpu.matmul %98, %24, %cst_39 {dimension_numbers = #tpu.dot_dimension_numbers<[1], [0], [0], [1], [0, 0, 1, 1], [], []>} : vector<2x32xf32>, vector<32x128xf32>, vector<2x128xf32> -> vector<2x128xf32>
    %100 = arith.addf %19, %99 : vector<2x128xf32>
    %101 = math.tanh %100 : vector<2x128xf32>
    %102 = vector.extract_strided_slice %101 {offsets = [0, 0], sizes = [2, 32], strides = [1, 1]} : vector<2x128xf32> to vector<2x32xf32>
    %cst_40 = arith.constant 5.000000e-01 : f32
    %103 = vector.broadcast %cst_40 : f32 to vector<2x32xf32>
    %104 = arith.mulf %103, %102 : vector<2x32xf32>
    %cst_41 = arith.constant 5.000000e-01 : f32
    %105 = vector.broadcast %cst_41 : f32 to vector<2x32xf32>
    %106 = arith.addf %104, %105 : vector<2x32xf32>
    %107 = vector.extract_strided_slice %101 {offsets = [0, 32], sizes = [2, 32], strides = [1, 1]} : vector<2x128xf32> to vector<2x32xf32>
    %cst_42 = arith.constant 5.000000e-01 : f32
    %108 = vector.broadcast %cst_42 : f32 to vector<2x32xf32>
    %109 = arith.mulf %108, %107 : vector<2x32xf32>
    %cst_43 = arith.constant 5.000000e-01 : f32
    %110 = vector.broadcast %cst_43 : f32 to vector<2x32xf32>
    %111 = arith.addf %109, %110 : vector<2x32xf32>
    %112 = vector.extract_strided_slice %101 {offsets = [0, 64], sizes = [2, 32], strides = [1, 1]} : vector<2x128xf32> to vector<2x32xf32>
    %113 = vector.extract_strided_slice %101 {offsets = [0, 96], sizes = [2, 32], strides = [1, 1]} : vector<2x128xf32> to vector<2x32xf32>
    %cst_44 = arith.constant 5.000000e-01 : f32
    %114 = vector.broadcast %cst_44 : f32 to vector<2x32xf32>
    %115 = arith.mulf %114, %113 : vector<2x32xf32>
    %cst_45 = arith.constant 5.000000e-01 : f32
    %116 = vector.broadcast %cst_45 : f32 to vector<2x32xf32>
    %117 = arith.addf %115, %116 : vector<2x32xf32>
    %118 = arith.mulf %111, %96 : vector<2x32xf32>
    %119 = arith.mulf %106, %112 : vector<2x32xf32>
    %120 = arith.addf %118, %119 : vector<2x32xf32>
    %121 = math.tanh %120 : vector<2x32xf32>
    %122 = arith.mulf %117, %121 : vector<2x32xf32>
    %cst_46 = arith.constant dense<0.000000e+00> : vector<2x128xf32>
    %123 = tpu.matmul %122, %24, %cst_46 {dimension_numbers = #tpu.dot_dimension_numbers<[1], [0], [0], [1], [0, 0, 1, 1], [], []>} : vector<2x32xf32>, vector<32x128xf32>, vector<2x128xf32> -> vector<2x128xf32>
    %124 = arith.addf %20, %123 : vector<2x128xf32>
    %125 = math.tanh %124 : vector<2x128xf32>
    %126 = vector.extract_strided_slice %125 {offsets = [0, 0], sizes = [2, 32], strides = [1, 1]} : vector<2x128xf32> to vector<2x32xf32>
    %cst_47 = arith.constant 5.000000e-01 : f32
    %127 = vector.broadcast %cst_47 : f32 to vector<2x32xf32>
    %128 = arith.mulf %127, %126 : vector<2x32xf32>
    %cst_48 = arith.constant 5.000000e-01 : f32
    %129 = vector.broadcast %cst_48 : f32 to vector<2x32xf32>
    %130 = arith.addf %128, %129 : vector<2x32xf32>
    %131 = vector.extract_strided_slice %125 {offsets = [0, 32], sizes = [2, 32], strides = [1, 1]} : vector<2x128xf32> to vector<2x32xf32>
    %cst_49 = arith.constant 5.000000e-01 : f32
    %132 = vector.broadcast %cst_49 : f32 to vector<2x32xf32>
    %133 = arith.mulf %132, %131 : vector<2x32xf32>
    %cst_50 = arith.constant 5.000000e-01 : f32
    %134 = vector.broadcast %cst_50 : f32 to vector<2x32xf32>
    %135 = arith.addf %133, %134 : vector<2x32xf32>
    %136 = vector.extract_strided_slice %125 {offsets = [0, 64], sizes = [2, 32], strides = [1, 1]} : vector<2x128xf32> to vector<2x32xf32>
    %137 = vector.extract_strided_slice %125 {offsets = [0, 96], sizes = [2, 32], strides = [1, 1]} : vector<2x128xf32> to vector<2x32xf32>
    %cst_51 = arith.constant 5.000000e-01 : f32
    %138 = vector.broadcast %cst_51 : f32 to vector<2x32xf32>
    %139 = arith.mulf %138, %137 : vector<2x32xf32>
    %cst_52 = arith.constant 5.000000e-01 : f32
    %140 = vector.broadcast %cst_52 : f32 to vector<2x32xf32>
    %141 = arith.addf %139, %140 : vector<2x32xf32>
    %142 = arith.mulf %135, %120 : vector<2x32xf32>
    %143 = arith.mulf %130, %136 : vector<2x32xf32>
    %144 = arith.addf %142, %143 : vector<2x32xf32>
    %145 = math.tanh %144 : vector<2x32xf32>
    %146 = arith.mulf %141, %145 : vector<2x32xf32>
    %cst_53 = arith.constant dense<0.000000e+00> : vector<2x128xf32>
    %147 = tpu.matmul %146, %24, %cst_53 {dimension_numbers = #tpu.dot_dimension_numbers<[1], [0], [0], [1], [0, 0, 1, 1], [], []>} : vector<2x32xf32>, vector<32x128xf32>, vector<2x128xf32> -> vector<2x128xf32>
    %148 = arith.addf %21, %147 : vector<2x128xf32>
    %149 = math.tanh %148 : vector<2x128xf32>
    %150 = vector.extract_strided_slice %149 {offsets = [0, 0], sizes = [2, 32], strides = [1, 1]} : vector<2x128xf32> to vector<2x32xf32>
    %cst_54 = arith.constant 5.000000e-01 : f32
    %151 = vector.broadcast %cst_54 : f32 to vector<2x32xf32>
    %152 = arith.mulf %151, %150 : vector<2x32xf32>
    %cst_55 = arith.constant 5.000000e-01 : f32
    %153 = vector.broadcast %cst_55 : f32 to vector<2x32xf32>
    %154 = arith.addf %152, %153 : vector<2x32xf32>
    %155 = vector.extract_strided_slice %149 {offsets = [0, 32], sizes = [2, 32], strides = [1, 1]} : vector<2x128xf32> to vector<2x32xf32>
    %cst_56 = arith.constant 5.000000e-01 : f32
    %156 = vector.broadcast %cst_56 : f32 to vector<2x32xf32>
    %157 = arith.mulf %156, %155 : vector<2x32xf32>
    %cst_57 = arith.constant 5.000000e-01 : f32
    %158 = vector.broadcast %cst_57 : f32 to vector<2x32xf32>
    %159 = arith.addf %157, %158 : vector<2x32xf32>
    %160 = vector.extract_strided_slice %149 {offsets = [0, 64], sizes = [2, 32], strides = [1, 1]} : vector<2x128xf32> to vector<2x32xf32>
    %161 = vector.extract_strided_slice %149 {offsets = [0, 96], sizes = [2, 32], strides = [1, 1]} : vector<2x128xf32> to vector<2x32xf32>
    %cst_58 = arith.constant 5.000000e-01 : f32
    %162 = vector.broadcast %cst_58 : f32 to vector<2x32xf32>
    %163 = arith.mulf %162, %161 : vector<2x32xf32>
    %cst_59 = arith.constant 5.000000e-01 : f32
    %164 = vector.broadcast %cst_59 : f32 to vector<2x32xf32>
    %165 = arith.addf %163, %164 : vector<2x32xf32>
    %166 = arith.mulf %159, %144 : vector<2x32xf32>
    %167 = arith.mulf %154, %160 : vector<2x32xf32>
    %168 = arith.addf %166, %167 : vector<2x32xf32>
    %169 = math.tanh %168 : vector<2x32xf32>
    %170 = arith.mulf %165, %169 : vector<2x32xf32>
    %cst_60 = arith.constant dense<0.000000e+00> : vector<2x128xf32>
    %171 = tpu.matmul %170, %24, %cst_60 {dimension_numbers = #tpu.dot_dimension_numbers<[1], [0], [0], [1], [0, 0, 1, 1], [], []>} : vector<2x32xf32>, vector<32x128xf32>, vector<2x128xf32> -> vector<2x128xf32>
    %172 = arith.addf %22, %171 : vector<2x128xf32>
    %173 = math.tanh %172 : vector<2x128xf32>
    %174 = vector.extract_strided_slice %173 {offsets = [0, 0], sizes = [2, 32], strides = [1, 1]} : vector<2x128xf32> to vector<2x32xf32>
    %cst_61 = arith.constant 5.000000e-01 : f32
    %175 = vector.broadcast %cst_61 : f32 to vector<2x32xf32>
    %176 = arith.mulf %175, %174 : vector<2x32xf32>
    %cst_62 = arith.constant 5.000000e-01 : f32
    %177 = vector.broadcast %cst_62 : f32 to vector<2x32xf32>
    %178 = arith.addf %176, %177 : vector<2x32xf32>
    %179 = vector.extract_strided_slice %173 {offsets = [0, 32], sizes = [2, 32], strides = [1, 1]} : vector<2x128xf32> to vector<2x32xf32>
    %cst_63 = arith.constant 5.000000e-01 : f32
    %180 = vector.broadcast %cst_63 : f32 to vector<2x32xf32>
    %181 = arith.mulf %180, %179 : vector<2x32xf32>
    %cst_64 = arith.constant 5.000000e-01 : f32
    %182 = vector.broadcast %cst_64 : f32 to vector<2x32xf32>
    %183 = arith.addf %181, %182 : vector<2x32xf32>
    %184 = vector.extract_strided_slice %173 {offsets = [0, 64], sizes = [2, 32], strides = [1, 1]} : vector<2x128xf32> to vector<2x32xf32>
    %185 = vector.extract_strided_slice %173 {offsets = [0, 96], sizes = [2, 32], strides = [1, 1]} : vector<2x128xf32> to vector<2x32xf32>
    %cst_65 = arith.constant 5.000000e-01 : f32
    %186 = vector.broadcast %cst_65 : f32 to vector<2x32xf32>
    %187 = arith.mulf %186, %185 : vector<2x32xf32>
    %cst_66 = arith.constant 5.000000e-01 : f32
    %188 = vector.broadcast %cst_66 : f32 to vector<2x32xf32>
    %189 = arith.addf %187, %188 : vector<2x32xf32>
    %190 = arith.mulf %183, %168 : vector<2x32xf32>
    %191 = arith.mulf %178, %184 : vector<2x32xf32>
    %192 = arith.addf %190, %191 : vector<2x32xf32>
    %193 = math.tanh %192 : vector<2x32xf32>
    %194 = arith.mulf %189, %193 : vector<2x32xf32>
    %cst_67 = arith.constant dense<0.000000e+00> : vector<2x128xf32>
    %195 = tpu.matmul %194, %24, %cst_67 {dimension_numbers = #tpu.dot_dimension_numbers<[1], [0], [0], [1], [0, 0, 1, 1], [], []>} : vector<2x32xf32>, vector<32x128xf32>, vector<2x128xf32> -> vector<2x128xf32>
    %196 = arith.addf %23, %195 : vector<2x128xf32>
    %197 = math.tanh %196 : vector<2x128xf32>
    %198 = vector.extract_strided_slice %197 {offsets = [0, 0], sizes = [2, 32], strides = [1, 1]} : vector<2x128xf32> to vector<2x32xf32>
    %cst_68 = arith.constant 5.000000e-01 : f32
    %199 = vector.broadcast %cst_68 : f32 to vector<2x32xf32>
    %200 = arith.mulf %199, %198 : vector<2x32xf32>
    %cst_69 = arith.constant 5.000000e-01 : f32
    %201 = vector.broadcast %cst_69 : f32 to vector<2x32xf32>
    %202 = arith.addf %200, %201 : vector<2x32xf32>
    %203 = vector.extract_strided_slice %197 {offsets = [0, 32], sizes = [2, 32], strides = [1, 1]} : vector<2x128xf32> to vector<2x32xf32>
    %cst_70 = arith.constant 5.000000e-01 : f32
    %204 = vector.broadcast %cst_70 : f32 to vector<2x32xf32>
    %205 = arith.mulf %204, %203 : vector<2x32xf32>
    %cst_71 = arith.constant 5.000000e-01 : f32
    %206 = vector.broadcast %cst_71 : f32 to vector<2x32xf32>
    %207 = arith.addf %205, %206 : vector<2x32xf32>
    %208 = vector.extract_strided_slice %197 {offsets = [0, 64], sizes = [2, 32], strides = [1, 1]} : vector<2x128xf32> to vector<2x32xf32>
    %209 = vector.extract_strided_slice %197 {offsets = [0, 96], sizes = [2, 32], strides = [1, 1]} : vector<2x128xf32> to vector<2x32xf32>
    %cst_72 = arith.constant 5.000000e-01 : f32
    %210 = vector.broadcast %cst_72 : f32 to vector<2x32xf32>
    %211 = arith.mulf %210, %209 : vector<2x32xf32>
    %cst_73 = arith.constant 5.000000e-01 : f32
    %212 = vector.broadcast %cst_73 : f32 to vector<2x32xf32>
    %213 = arith.addf %211, %212 : vector<2x32xf32>
    %214 = arith.mulf %207, %192 : vector<2x32xf32>
    %215 = arith.mulf %202, %208 : vector<2x32xf32>
    %216 = arith.addf %214, %215 : vector<2x32xf32>
    %217 = math.tanh %216 : vector<2x32xf32>
    %218 = arith.mulf %213, %217 : vector<2x32xf32>
    %c0_74 = arith.constant 0 : index
    %c0_75 = arith.constant 0 : index
    %219 = vector.load %arg8[%c0_74, %c0_75] : memref<32x128xf32, #tpu.memory_space<vmem>>, vector<32x128xf32>
    %c0_76 = arith.constant 0 : index
    %c0_77 = arith.constant 0 : index
    %220 = vector.load %arg9[%c0_76, %c0_77] : memref<1x128xf32, #tpu.memory_space<vmem>>, vector<1x128xf32>
    %cst_78 = arith.constant dense<0.000000e+00> : vector<2x128xf32>
    %221 = tpu.matmul %50, %219, %cst_78 {dimension_numbers = #tpu.dot_dimension_numbers<[1], [0], [0], [1], [0, 0, 1, 1], [], []>} : vector<2x32xf32>, vector<32x128xf32>, vector<2x128xf32> -> vector<2x128xf32>
    %222 = vector.broadcast %220 : vector<1x128xf32> to vector<2x128xf32>
    %223 = arith.addf %221, %222 : vector<2x128xf32>
    %cst_79 = arith.constant 0.000000e+00 : f32
    %224 = vector.broadcast %cst_79 : f32 to vector<2x128xf32>
    %225 = arith.cmpf oge, %223, %224 : vector<2x128xf32>
    %cst_80 = arith.constant 0.00999999977 : f32
    %226 = vector.broadcast %cst_80 : f32 to vector<2x128xf32>
    %227 = arith.mulf %226, %223 : vector<2x128xf32>
    %228 = arith.select %225, %223, %227 : vector<2x128xi1>, vector<2x128xf32>
    %c0_81 = arith.constant 0 : index
    %c0_82 = arith.constant 0 : index
    %c0_83 = arith.constant 0 : index
    %229 = vector.load %arg10[%c0_81, %c0_82, %c0_83] : memref<8x2x128xf32, #tpu.memory_space<vmem>>, vector<1x2x128xf32>
    %230 = vector.shape_cast %229 : vector<1x2x128xf32> to vector<2x128xf32>
    %231 = vector.shape_cast %228 : vector<2x128xf32> to vector<1x2x128xf32>
    tpu.vector_store %arg10[%c0_81, %c0_82, %c0_83], %231 {strides = array<i32>} : memref<8x2x128xf32, #tpu.memory_space<vmem>>, vector<1x2x128xf32>,
    %cst_84 = arith.constant dense<0.000000e+00> : vector<2x128xf32>
    %232 = tpu.matmul %74, %219, %cst_84 {dimension_numbers = #tpu.dot_dimension_numbers<[1], [0], [0], [1], [0, 0, 1, 1], [], []>} : vector<2x32xf32>, vector<32x128xf32>, vector<2x128xf32> -> vector<2x128xf32>
    %233 = vector.broadcast %220 : vector<1x128xf32> to vector<2x128xf32>
    %234 = arith.addf %232, %233 : vector<2x128xf32>
    %cst_85 = arith.constant 0.000000e+00 : f32
    %235 = vector.broadcast %cst_85 : f32 to vector<2x128xf32>
    %236 = arith.cmpf oge, %234, %235 : vector<2x128xf32>
    %cst_86 = arith.constant 0.00999999977 : f32
    %237 = vector.broadcast %cst_86 : f32 to vector<2x128xf32>
    %238 = arith.mulf %237, %234 : vector<2x128xf32>
    %239 = arith.select %236, %234, %238 : vector<2x128xi1>, vector<2x128xf32>
    %c1 = arith.constant 1 : index
    %c0_87 = arith.constant 0 : index
    %c0_88 = arith.constant 0 : index
    %240 = vector.load %arg10[%c1, %c0_87, %c0_88] : memref<8x2x128xf32, #tpu.memory_space<vmem>>, vector<1x2x128xf32>
    %241 = vector.shape_cast %240 : vector<1x2x128xf32> to vector<2x128xf32>
    %242 = vector.shape_cast %239 : vector<2x128xf32> to vector<1x2x128xf32>
    tpu.vector_store %arg10[%c1, %c0_87, %c0_88], %242 {strides = array<i32>} : memref<8x2x128xf32, #tpu.memory_space<vmem>>, vector<1x2x128xf32>,
    %cst_89 = arith.constant dense<0.000000e+00> : vector<2x128xf32>
    %243 = tpu.matmul %98, %219, %cst_89 {dimension_numbers = #tpu.dot_dimension_numbers<[1], [0], [0], [1], [0, 0, 1, 1], [], []>} : vector<2x32xf32>, vector<32x128xf32>, vector<2x128xf32> -> vector<2x128xf32>
    %244 = vector.broadcast %220 : vector<1x128xf32> to vector<2x128xf32>
    %245 = arith.addf %243, %244 : vector<2x128xf32>
    %cst_90 = arith.constant 0.000000e+00 : f32
    %246 = vector.broadcast %cst_90 : f32 to vector<2x128xf32>
    %247 = arith.cmpf oge, %245, %246 : vector<2x128xf32>
    %cst_91 = arith.constant 0.00999999977 : f32
    %248 = vector.broadcast %cst_91 : f32 to vector<2x128xf32>
    %249 = arith.mulf %248, %245 : vector<2x128xf32>
    %250 = arith.select %247, %245, %249 : vector<2x128xi1>, vector<2x128xf32>
    %c2 = arith.constant 2 : index
    %c0_92 = arith.constant 0 : index
    %c0_93 = arith.constant 0 : index
    %251 = vector.load %arg10[%c2, %c0_92, %c0_93] : memref<8x2x128xf32, #tpu.memory_space<vmem>>, vector<1x2x128xf32>
    %252 = vector.shape_cast %251 : vector<1x2x128xf32> to vector<2x128xf32>
    %253 = vector.shape_cast %250 : vector<2x128xf32> to vector<1x2x128xf32>
    tpu.vector_store %arg10[%c2, %c0_92, %c0_93], %253 {strides = array<i32>} : memref<8x2x128xf32, #tpu.memory_space<vmem>>, vector<1x2x128xf32>,
    %cst_94 = arith.constant dense<0.000000e+00> : vector<2x128xf32>
    %254 = tpu.matmul %122, %219, %cst_94 {dimension_numbers = #tpu.dot_dimension_numbers<[1], [0], [0], [1], [0, 0, 1, 1], [], []>} : vector<2x32xf32>, vector<32x128xf32>, vector<2x128xf32> -> vector<2x128xf32>
    %255 = vector.broadcast %220 : vector<1x128xf32> to vector<2x128xf32>
    %256 = arith.addf %254, %255 : vector<2x128xf32>
    %cst_95 = arith.constant 0.000000e+00 : f32
    %257 = vector.broadcast %cst_95 : f32 to vector<2x128xf32>
    %258 = arith.cmpf oge, %256, %257 : vector<2x128xf32>
    %cst_96 = arith.constant 0.00999999977 : f32
    %259 = vector.broadcast %cst_96 : f32 to vector<2x128xf32>
    %260 = arith.mulf %259, %256 : vector<2x128xf32>
    %261 = arith.select %258, %256, %260 : vector<2x128xi1>, vector<2x128xf32>
    %c3 = arith.constant 3 : index
    %c0_97 = arith.constant 0 : index
    %c0_98 = arith.constant 0 : index
    %262 = vector.load %arg10[%c3, %c0_97, %c0_98] : memref<8x2x128xf32, #tpu.memory_space<vmem>>, vector<1x2x128xf32>
    %263 = vector.shape_cast %262 : vector<1x2x128xf32> to vector<2x128xf32>
    %264 = vector.shape_cast %261 : vector<2x128xf32> to vector<1x2x128xf32>
    tpu.vector_store %arg10[%c3, %c0_97, %c0_98], %264 {strides = array<i32>} : memref<8x2x128xf32, #tpu.memory_space<vmem>>, vector<1x2x128xf32>,
    %cst_99 = arith.constant dense<0.000000e+00> : vector<2x128xf32>
    %265 = tpu.matmul %146, %219, %cst_99 {dimension_numbers = #tpu.dot_dimension_numbers<[1], [0], [0], [1], [0, 0, 1, 1], [], []>} : vector<2x32xf32>, vector<32x128xf32>, vector<2x128xf32> -> vector<2x128xf32>
    %266 = vector.broadcast %220 : vector<1x128xf32> to vector<2x128xf32>
    %267 = arith.addf %265, %266 : vector<2x128xf32>
    %cst_100 = arith.constant 0.000000e+00 : f32
    %268 = vector.broadcast %cst_100 : f32 to vector<2x128xf32>
    %269 = arith.cmpf oge, %267, %268 : vector<2x128xf32>
    %cst_101 = arith.constant 0.00999999977 : f32
    %270 = vector.broadcast %cst_101 : f32 to vector<2x128xf32>
    %271 = arith.mulf %270, %267 : vector<2x128xf32>
    %272 = arith.select %269, %267, %271 : vector<2x128xi1>, vector<2x128xf32>
    %c4 = arith.constant 4 : index
    %c0_102 = arith.constant 0 : index
    %c0_103 = arith.constant 0 : index
    %273 = vector.load %arg10[%c4, %c0_102, %c0_103] : memref<8x2x128xf32, #tpu.memory_space<vmem>>, vector<1x2x128xf32>
    %274 = vector.shape_cast %273 : vector<1x2x128xf32> to vector<2x128xf32>
    %275 = vector.shape_cast %272 : vector<2x128xf32> to vector<1x2x128xf32>
    tpu.vector_store %arg10[%c4, %c0_102, %c0_103], %275 {strides = array<i32>} : memref<8x2x128xf32, #tpu.memory_space<vmem>>, vector<1x2x128xf32>,
    %cst_104 = arith.constant dense<0.000000e+00> : vector<2x128xf32>
    %276 = tpu.matmul %170, %219, %cst_104 {dimension_numbers = #tpu.dot_dimension_numbers<[1], [0], [0], [1], [0, 0, 1, 1], [], []>} : vector<2x32xf32>, vector<32x128xf32>, vector<2x128xf32> -> vector<2x128xf32>
    %277 = vector.broadcast %220 : vector<1x128xf32> to vector<2x128xf32>
    %278 = arith.addf %276, %277 : vector<2x128xf32>
    %cst_105 = arith.constant 0.000000e+00 : f32
    %279 = vector.broadcast %cst_105 : f32 to vector<2x128xf32>
    %280 = arith.cmpf oge, %278, %279 : vector<2x128xf32>
    %cst_106 = arith.constant 0.00999999977 : f32
    %281 = vector.broadcast %cst_106 : f32 to vector<2x128xf32>
    %282 = arith.mulf %281, %278 : vector<2x128xf32>
    %283 = arith.select %280, %278, %282 : vector<2x128xi1>, vector<2x128xf32>
    %c5 = arith.constant 5 : index
    %c0_107 = arith.constant 0 : index
    %c0_108 = arith.constant 0 : index
    %284 = vector.load %arg10[%c5, %c0_107, %c0_108] : memref<8x2x128xf32, #tpu.memory_space<vmem>>, vector<1x2x128xf32>
    %285 = vector.shape_cast %284 : vector<1x2x128xf32> to vector<2x128xf32>
    %286 = vector.shape_cast %283 : vector<2x128xf32> to vector<1x2x128xf32>
    tpu.vector_store %arg10[%c5, %c0_107, %c0_108], %286 {strides = array<i32>} : memref<8x2x128xf32, #tpu.memory_space<vmem>>, vector<1x2x128xf32>,
    %cst_109 = arith.constant dense<0.000000e+00> : vector<2x128xf32>
    %287 = tpu.matmul %194, %219, %cst_109 {dimension_numbers = #tpu.dot_dimension_numbers<[1], [0], [0], [1], [0, 0, 1, 1], [], []>} : vector<2x32xf32>, vector<32x128xf32>, vector<2x128xf32> -> vector<2x128xf32>
    %288 = vector.broadcast %220 : vector<1x128xf32> to vector<2x128xf32>
    %289 = arith.addf %287, %288 : vector<2x128xf32>
    %cst_110 = arith.constant 0.000000e+00 : f32
    %290 = vector.broadcast %cst_110 : f32 to vector<2x128xf32>
    %291 = arith.cmpf oge, %289, %290 : vector<2x128xf32>
    %cst_111 = arith.constant 0.00999999977 : f32
    %292 = vector.broadcast %cst_111 : f32 to vector<2x128xf32>
    %293 = arith.mulf %292, %289 : vector<2x128xf32>
    %294 = arith.select %291, %289, %293 : vector<2x128xi1>, vector<2x128xf32>
    %c6 = arith.constant 6 : index
    %c0_112 = arith.constant 0 : index
    %c0_113 = arith.constant 0 : index
    %295 = vector.load %arg10[%c6, %c0_112, %c0_113] : memref<8x2x128xf32, #tpu.memory_space<vmem>>, vector<1x2x128xf32>
    %296 = vector.shape_cast %295 : vector<1x2x128xf32> to vector<2x128xf32>
    %297 = vector.shape_cast %294 : vector<2x128xf32> to vector<1x2x128xf32>
    tpu.vector_store %arg10[%c6, %c0_112, %c0_113], %297 {strides = array<i32>} : memref<8x2x128xf32, #tpu.memory_space<vmem>>, vector<1x2x128xf32>,
    %cst_114 = arith.constant dense<0.000000e+00> : vector<2x128xf32>
    %298 = tpu.matmul %218, %219, %cst_114 {dimension_numbers = #tpu.dot_dimension_numbers<[1], [0], [0], [1], [0, 0, 1, 1], [], []>} : vector<2x32xf32>, vector<32x128xf32>, vector<2x128xf32> -> vector<2x128xf32>
    %299 = vector.broadcast %220 : vector<1x128xf32> to vector<2x128xf32>
    %300 = arith.addf %298, %299 : vector<2x128xf32>
    %cst_115 = arith.constant 0.000000e+00 : f32
    %301 = vector.broadcast %cst_115 : f32 to vector<2x128xf32>
    %302 = arith.cmpf oge, %300, %301 : vector<2x128xf32>
    %cst_116 = arith.constant 0.00999999977 : f32
    %303 = vector.broadcast %cst_116 : f32 to vector<2x128xf32>
    %304 = arith.mulf %303, %300 : vector<2x128xf32>
    %305 = arith.select %302, %300, %304 : vector<2x128xi1>, vector<2x128xf32>
    %c7 = arith.constant 7 : index
    %c0_117 = arith.constant 0 : index
    %c0_118 = arith.constant 0 : index
    %306 = vector.load %arg10[%c7, %c0_117, %c0_118] : memref<8x2x128xf32, #tpu.memory_space<vmem>>, vector<1x2x128xf32>
    %307 = vector.shape_cast %306 : vector<1x2x128xf32> to vector<2x128xf32>
    %308 = vector.shape_cast %305 : vector<2x128xf32> to vector<1x2x128xf32>
    tpu.vector_store %arg10[%c7, %c0_117, %c0_118], %308 {strides = array<i32>} : memref<8x2x128xf32, #tpu.memory_space<vmem>>, vector<1x2x128xf32>,
    %c0_119 = arith.constant 0 : index
    %c0_120 = arith.constant 0 : index
    %309 = vector.load %arg11[%c0_119, %c0_120] : memref<2x32xf32, #tpu.memory_space<vmem>>, vector<2x32xf32>
    tpu.vector_store %arg11[%c0_119, %c0_120], %218 {strides = array<i32>} : memref<2x32xf32, #tpu.memory_space<vmem>>, vector<2x32xf32>,
    %c0_121 = arith.constant 0 : index
    %c0_122 = arith.constant 0 : index
    %310 = vector.load %arg12[%c0_121, %c0_122] : memref<2x32xf32, #tpu.memory_space<vmem>>, vector<2x32xf32>
    tpu.vector_store %arg12[%c0_121, %c0_122], %216 {strides = array<i32>} : memref<2x32xf32, #tpu.memory_space<vmem>>, vector<2x32xf32>,
    return
  }
}

</mosaic_0001>

<bundles_post_ra>
// kernel: dqn_lstm_forward.1
= control target key start
LH: loop header
LB: loop body
LE: loop exit
PB: predicated region body
PF: predicated region fallthrough
CT: control target
= control target key end

     0   :  { %18 = vsyncpa [#allocation3], 0  ;;  %s2800_s0 = inlined_call_operand.vmem [shape: f32[16,16], index: 0, kind: input, shape index: {}]   ;;  %s2801_s1 = inlined_call_operand.vmem [shape: f32[2,32], index: 1, kind: input, shape index: {}]   ;;  %s2802_s2 = inlined_call_operand.hbm [shape: f32[2,32], index: 2, kind: input, shape index: {}]   ;;  %s2803_s3 = inlined_call_operand.hbm [shape: f32[16,32], index: 3, kind: input, shape index: {}]   ;;  %s2804_s4 = inlined_call_operand.hbm [shape: f32[1,32], index: 4, kind: input, shape index: {}]   ;;  %s2805_s5 = inlined_call_operand.vmem [shape: f32[32,128], index: 5, kind: input, shape index: {}]   ;;  %s2806_s6 = inlined_call_operand.vmem [shape: f32[32,128], index: 6, kind: input, shape index: {}]   ;;  %s2807_s7 = inlined_call_operand.vmem [shape: f32[1,128], index: 7, kind: input, shape index: {}]   ;;  %s2808_s8 = inlined_call_operand.hbm [shape: f32[32,128], index: 8, kind: input, shape index: {}]   ;;  %s2809_s9 = inlined_call_operand.vmem [shape: f32[1,128], index: 9, kind: input, shape index: {}]   ;;  %s2810_s10 = inlined_call_operand.vmem [shape: f32[8,2,128], index: 10, kind: output, shape index: {0}]   ;;  %s2811_s11 = inlined_call_operand.hbm [shape: f32[2,32], index: 11, kind: output, shape index: {1}]   ;;  %s2812_s12 = inlined_call_operand.hbm [shape: f32[2,32], index: 12, kind: output, shape index: {2}]  }
   0x1   :  { %19 = vsyncpa [#allocation6], 0 }
   0x2   :  { %20 = vsyncpa [#allocation9], 0 }
   0x3   :  { %21 = vsyncpa [#allocation4], 0 }
   0x4   :  { %22 = vsyncpa [#allocation12], 0  ;;  %s2374_s21 = smov [#allocation5]   ;;  %s2232_s25 = scalar_lea.hbm %s2803_s3, 256 }
   0x5   :  { %s42_s22 = sshll.u32 %s2374_s21, 4  ;;  %p2233_p0 = scmp.ne.s32.totalorder %s2803_s3, %s2232_s25  ;;  %s43_s22 = int_to_ptr.vmem [resolvable:$true] %s42_s22 }
   0x6   :  { %p2236_p1 = scmp.lt.u32.totalorder %s2232_s25, %s2803_s3 }
   0x8   :  { %p2238_p2 = pnand %p2236_p1, %p2233_p0 }
   0xa   :  { %2241 = shalt.err (!%p2238_p2)
}
   0xb   :  { %s2242_s30 = scalar_lea.vmem %s43_s22, 256  ;;  %p2247_p4 = scmp.lt.s32.totalorder %s43_s22, %s43_s22 }
   0xc   :  { %p2243_p3 = scmp.ne.s32.totalorder %s43_s22, %s2242_s30  ;;  %p2248_p5 = scmp.lt.s32.totalorder %s2242_s30, %s2242_s30 }
   0xe   :  { %p2249_p6 = por %p2248_p5, %p2247_p4 }
  0x10   :  { %p2250_p7 = pnand %p2249_p6, %p2243_p3 }
  0x12   :  { %2253 = shalt.err (!%p2250_p7)
}
  0x13   :  { %s2375_s13 = smov 128   ;;  %s2376_s14 = smov 8  }
  0x14   :  { %48 = dma.hbm_to_vmem [thread:$0]  %s2803_s3, 256, %s43_s22, [#allocation6], %s2375_s13, %s2375_s13, %s2376_s14  }
  0x15   :  { %s2377_s17 = smov [#allocation2]   ;;  %s2378_s19 = smov [#allocation7]  }
  0x16   :  { %s33_s18 = sshll.u32 %s2377_s17, 4  ;;  %s55_s20 = sshll.u32 %s2378_s19, 4  ;;  %s34_s18 = int_to_ptr.vmem [resolvable:$true] %s33_s18  ;;  %s56_s20 = int_to_ptr.vmem [resolvable:$true] %s55_s20 }
  0x17   :  { %s2254_s24 = scalar_lea.hbm %s2802_s2, 32 }
  0x18   :  { %p2255_p8 = scmp.ne.s32.totalorder %s2802_s2, %s2254_s24  ;;  %p2258_p9 = scmp.lt.u32.totalorder %s2254_s24, %s2802_s2 }
  0x1a   :  { %p2260_p10 = pnand %p2258_p9, %p2255_p8 }
  0x1c   :  { %2263 = shalt.err (!%p2260_p10)
}
  0x1d   :  { %s2264_s3 = scalar_lea.vmem %s34_s18, 32  ;;  %p2269_p12 = scmp.lt.s32.totalorder %s34_s18, %s34_s18 }
  0x1e   :  { %p2265_p11 = scmp.ne.s32.totalorder %s34_s18, %s2264_s3  ;;  %p2270_p13 = scmp.lt.s32.totalorder %s2264_s3, %s2264_s3 }
  0x20   :  { %p2271_p0 = por %p2270_p13, %p2269_p12 }
  0x22   :  { %p2272_p1 = pnand %p2271_p0, %p2265_p11 }
  0x24   :  { %2275 = shalt.err (!%p2272_p1)
}
  0x25   :  { %36 = dma.hbm_to_vmem [thread:$0]  %s2802_s2, 32, %s34_s18, [#allocation3]  }
  0x26   :  { %s2276_s16 = scalar_lea.hbm %s2804_s4, 16 }
  0x27   :  { %p2277_p2 = scmp.ne.s32.totalorder %s2804_s4, %s2276_s16  ;;  %p2280_p3 = scmp.lt.u32.totalorder %s2276_s16, %s2804_s4 }
  0x29   :  { %p2282_p4 = pnand %p2280_p3, %p2277_p2 }
  0x2b   :  { %2285 = shalt.err (!%p2282_p4)
}
  0x2c   :  { %s2286_s24 = scalar_lea.vmem %s56_s20, 16  ;;  %s2290_s25 = scalar_lea.vmem %s56_s20, 32 }
  0x2d   :  { %p2287_p5 = scmp.ne.s32.totalorder %s56_s20, %s2286_s24  ;;  %p2291_p6 = scmp.lt.s32.totalorder %s56_s20, %s56_s20 }
  0x2e   :  { %p2292_p7 = scmp.lt.s32.totalorder %s2290_s25, %s2286_s24 }
  0x30   :  { %p2293_p8 = por %p2292_p7, %p2291_p6 }
  0x32   :  { %p2294_p9 = pnand %p2293_p8, %p2287_p5 }
  0x34   :  { %2297 = shalt.err (!%p2294_p9)
}
  0x35   :  { %58 = dma.hbm_to_vmem [thread:$0]  %s2804_s4, 16, %s56_s20, [#allocation6]  }
  0x36   :  { %s2379_s26 = smov [#allocation8]   ;;  %s2298_s22 = scalar_lea.hbm %s2808_s8, 512 }
  0x37   :  { %s70_s27 = sshll.u32 %s2379_s26, 4  ;;  %p2299_p10 = scmp.ne.s32.totalorder %s2808_s8, %s2298_s22  ;;  %s71_s27 = int_to_ptr.vmem [resolvable:$true] %s70_s27 }
  0x38   :  { %p2302_p11 = scmp.lt.u32.totalorder %s2298_s22, %s2808_s8 }
  0x3a   :  { %p2304_p12 = pnand %p2302_p11, %p2299_p10 }
  0x3c   :  { %2307 = shalt.err (!%p2304_p12)
}
  0x3d   :  { %s2308_s17 = scalar_lea.vmem %s71_s27, 512  ;;  %p2313_p0 = scmp.lt.s32.totalorder %s71_s27, %s71_s27 }
  0x3e   :  { %p2309_p13 = scmp.ne.s32.totalorder %s71_s27, %s2308_s17  ;;  %p2314_p1 = scmp.lt.s32.totalorder %s2308_s17, %s2308_s17 }
  0x40   :  { %p2315_p2 = por %p2314_p1, %p2313_p0 }
  0x42   :  { %p2316_p3 = pnand %p2315_p2, %p2309_p13 }
  0x44   :  { %2319 = shalt.err (!%p2316_p3)
}
  0x45   :  { %76 = dma.hbm_to_vmem [thread:$0]  %s2808_s8, 512, %s71_s27, [#allocation9], %s2375_s13, %s2375_s13, %s2376_s14  }
  0x46   :  { %2364 = dma.done.wait [#allocation3], 32  }
  0x47   :  { %2365 = vsyncadd [#allocation3], 4294967264 }
  0x48   :  { %2366 = dma.done.wait [#allocation6], 272  }
  0x49   :  { %2367 = vsyncadd [#allocation6], 4294967024 }
  0x4a   :  { %2368 = dma.done.wait [#allocation9], 512  }
  0x4b   :  { %2369 = vsyncadd [#allocation9], 4294966784  ;;  %vm102_vm0 = vcmask 130048   ;;  %v93_v0 = vld [vmem:[#allocation5] sm:$0xff]  ;;  %v94_v1 = vld [vmem:[#allocation5 + $0x8] sm:$0xff]  ;;  %v2380_v13 = vmov 0.0|0.0  }
  0x4c   :  { %v91_v2 = vld [vmem:[%s2800_s0] sm:$0xff]  ;;  %v2078_v3 = vpack.c.bf16 %v94_v1, %v93_v0  ;;  %v92_v4 = vld [vmem:[%s2800_s0 + $0x8] sm:$0xff]  ;;  %v192_v11 = vld [vmem:[%s2805_s5 + $0x10] sm:$0xff]  ;;  %vm201_vm1 = vcmask 261120   ;;  %vm2381_vm2 = vmmov 0   ;;  %v2382_v19 = vmov 0.0  }
  0x4d   :  { %1888 = vmatprep.mubr.msk.f32.mxu0 %vm102_vm0, %v91_v2  ;;  %v190_v5 = vld [vmem:[%s2805_s5] sm:$0xff]  ;;  %v191_v6 = vld [vmem:[%s2805_s5 + $0x8] sm:$0xff]  ;;  %v193_v12 = vld [vmem:[%s2805_s5 + $0x18] sm:$0xff]  ;;  %s2383_s4 = smov 64   ;;  %s2384_s20 = smov 32   ;;  %vm1722_vm12 = vcmask 261126  }
  0x4e   :  { %2079 = vmatprep.subr.bf16.mxu0 %v2078_v3  ;;  %v2082_v7 = vpack.c.bf16 %v191_v6, %v190_v5  ;;  %v283_v8 = vld [vmem:[%s2806_s6] sm:$0xff]  ;;  %v284_v9 = vld [vmem:[%s2806_s6 + $0x8] sm:$0xff]  ;;  %v2086_v14 = vpack.c.bf16 %v193_v12, %v192_v11  ;;  %v285_v15 = vld [vmem:[%s2806_s6 + $0x10] sm:$0xff]  ;;  %s2385_s3 = smov 96   ;;  %s2386_s22 = smov [#allocation10]  }
  0x4f   :  { %2081 = vmatpush3.bf16.msra.mxu0 %v2078_v3  ;;  %v2525_v10 = vpack.c.bf16 %v284_v9, %v283_v8  ;;  %v286_v16 = vld [vmem:[%s2806_s6 + $0x18] sm:$0xff]  ;;  %v287_v18 = vld [vmem:[%s2801_s1] sm:$0x3]  ;;  %v1764_v20 = vld [vmem:[#allocation7] ss:$0 sm:$0xff]  ;;  %s1737_s29 = sshll.u32 %s2386_s22, 4  ;;  %s1738_s29 = int_to_ptr.vmem [resolvable:$true] %s1737_s29 }
  0x50   :  { %2083 = vmatprep.subr.bf16.mxu1 %v2082_v7  ;;  %2090 = vmatprep.subr.bf16.mxu0 %v2380_v13  ;;  %v2542_v17 = vpack.c.bf16 %v286_v16, %v285_v15  ;;  %v1767_v31 = vld [vmem:[%s2807_s7] ss:$0 sm:$0xff]  ;;  %s2387_s30 = smov [#allocation11]   ;;  %s2320_s16 = scalar_lea.vmem %s1738_s29, 32 }
  0x51   :  { %2085 = vmatpush3.bf16.msra.mxu1 %v2082_v7  ;;  %v288_v38 = vld [vmem:[#allocation2] sm:$0x3]  ;;  %s1747_s15 = sshll.u32 %s2387_s30, 4  ;;  %p2321_p4 = scmp.ne.s32.totalorder %s1738_s29, %s2320_s16  ;;  %s1748_s15 = int_to_ptr.vmem [resolvable:$true] %s1747_s15 }
  0x52   :  { %1889 = vmatmul.mubr.msk.f32.vlgmr.msra.gmra.mrb[0].mxu0 %vm102_vm0, %v92_v4  ;;  %2087 = vmatprep.subr.bf16.mxu1 %v2086_v14  ;;  %p2325_p5 = scmp.lt.s32.totalorder %s1738_s29, %s1738_s29  ;;  %p2326_p6 = scmp.lt.s32.totalorder %s2320_s16, %s2320_s16 }
  0x53   :  { %2092 = vmatpush3.bf16.msra.mxu0 %v2525_v10  ;;  %1910 = vmatprep.mubr.msk.f32.mxu0 %vm2381_vm2, %v2382_v19 }
  0x54   :  { %2093 = vmatprep.subr.bf16.mxu0 %v2380_v13  ;;  %p2327_p7 = por %p2326_p6, %p2325_p5 }
  0x55   :  { %2089 = vmatpush3.bf16.msra.mxu1 %v2086_v14 }
  0x56   :  { %2096 = vmatprep.subr.bf16.mxu1 %v2380_v13  ;;  %p2328_p8 = pnand %p2327_p7, %p2321_p4 }
  0x57   :  { %2095 = vmatpush3.bf16.msra.mxu0 %v2542_v17 }
  0x58   :  { %2102 = vmatprep.subr.bf16.mxu0 %v2380_v13 }
  0x5a   :  { %1911 = vmatmul.mubr.msk.f32.vlgmr.msra.gmra.mrb[2].mxu0 %vm201_vm1, %v287_v18 }
  0x5b   :  { %2104 = vmatpush3.bf16.msra.mxu0 %v2525_v10  ;;  %1932 = vmatprep.mubr.msk.f32.mxu0 %vm2381_vm2, %v2382_v19 }
  0x5c   :  { %2105 = vmatprep.subr.bf16.mxu0 %v2380_v13 }
  0x5f   :  { %2107 = vmatpush3.bf16.msra.mxu0 %v2542_v17 }
  0x60   :  { %2114 = vmatprep.subr.bf16.mxu0 %v2380_v13 }
 0x125   :  { %v1890_v21 = vpop.f32.mrb[0].mxu0 }
 0x126   :  { %v181_v22 = vadd.f32 %v1890_v21, %v1764_v20  ;;  %v175_v23 = vpop.f32.mrb[1].mxu0 }
 0x127   :  { %v176_v24 = vadd.f32 %v1764_v20, %v175_v23 }
 0x128   :  { %v187_v25 = vmul.f32 0.01, %v181_v22  ;;  %vm185_vm3 = vcmp.ge.f32.partialorder %v181_v22, 0.0 }
 0x129   :  { %vm184_vm4 = vcmp.ge.f32.partialorder %v176_v24, 0.0  ;;  %v186_v26 = vmul.f32 0.01, %v176_v24 }
 0x12a   :  { %v189_v28 = vsel %vm185_vm3, %v181_v22, %v187_v25 }
 0x12b   :  { %v188_v27 = vsel %vm184_vm4, %v176_v24, %v186_v26 }
 0x12c   :  { %1899 = vmatprep.mubr.msk.f32.mxu1 %vm201_vm1, %v188_v27 }
 0x12d   :  { %1900 = vmatmul.mubr.msk.f32.vlgmr.msra.gmra.mrb[0].mxu1 %vm201_vm1, %v189_v28  ;;  %v358_v29 = vpop.f32.mrb[2].mxu0 }
 0x12e   :  { %2098 = vmatpush3.bf16.msra.mxu1 %v2525_v10  ;;  %1921 = vmatprep.mubr.msk.f32.mxu1 %vm2381_vm2, %v2382_v19  ;;  %v1912_v30 = vpop.f32.mrb[3].mxu0 }
 0x12f   :  { %2099 = vmatprep.subr.bf16.mxu1 %v2380_v13 }
 0x132   :  { %2101 = vmatpush3.bf16.msra.mxu1 %v2542_v17 }
 0x133   :  { %2108 = vmatprep.subr.bf16.mxu1 %v2380_v13 }
 0x200   :  { %v1901_v32 = vpop.f32.mrb[0].mxu1 }
 0x201   :  { %v2570_v33 = vadd.f32 %v1901_v32, %v1767_v31  ;;  %v274_v34 = vpop.f32.mrb[1].mxu1 }
 0x202   :  { %v2572_v35 = vadd.f32 %v1767_v31, %v274_v34 }
 0x204   :  { %v362_v36 = vadd.f32 %v358_v29, %v2572_v35 }
 0x206   :  { %2200 = vtanh.f32 %v362_v36 }
 0x210   :  { %v2201_v37 = vpop.eup %2200 }
 0x211   :  { %372 = vrot.lane.b32.xlu0 %v2201_v37, %s2383_s4  ;;  %v364_v39 = vmul.f32 0.5, %v2201_v37 }
 0x213   :  { %v365_v40 = vadd.f32 0.5, %v364_v39 }
 0x215   :  { %367 = vrot.lane.b32.xlu0 %v288_v38, %s2384_s20 }
 0x283   :  { %v373_v41 = vpop.permute.xlu0 %372 }
 0x284   :  { %v375_v42 = vmul.f32 %v373_v41, %v365_v40 }
 0x286   :  { %377 = vrot.lane.b32.xlu1 %v375_v42, %s2384_s20 }
 0x287   :  { %v368_v43 = vpop.permute.xlu0 %367 }
 0x288   :  { %v370_v44 = vmul.f32 %v368_v43, %v365_v40 }
 0x2f8   :  { %v378_v45 = vpop.permute.xlu1 %377 }
 0x2f9   :  { %v380_v46 = vadd.f32 %v378_v45, %v370_v44 }
 0x2fb   :  { %2202 = vtanh.f32 %v380_v46  ;;  %v470_v60 = vrot.slane %v380_v46, 6 }
 0x305   :  { %v2203_v47 = vpop.eup %2202 }
 0x306   :  { %383 = vrot.lane.b32.xlu1 %v2203_v47, %s2383_s4 }
 0x378   :  { %v384_v48 = vpop.permute.xlu1 %383 }
 0x379   :  { %v386_v49 = vmul.f32 %v384_v48, %v365_v40 }
 0x37b   :  { %388 = vrot.lane.b32.xlu0 %v386_v49, %s2384_s20 }
 0x3ed   :  { %v2580_v50 = vpop.permute.xlu0 %388 }
 0x3ee   :  { %1922 = vmatmul.mubr.msk.f32.vlgmr.msra.gmra.mrb[2].mxu1 %vm201_vm1, %v2580_v50 }
 0x3ef   :  { %2110 = vmatpush3.bf16.msra.mxu1 %v2525_v10  ;;  %1943 = vmatprep.mubr.msk.f32.mxu1 %vm2381_vm2, %v2382_v19 }
 0x3f0   :  { %2111 = vmatprep.subr.bf16.mxu1 %v2380_v13 }
 0x3f3   :  { %2113 = vmatpush3.bf16.msra.mxu1 %v2542_v17 }
 0x3f4   :  { %2120 = vmatprep.subr.bf16.mxu1 %v2380_v13 }
 0x4c1   :  { %v458_v51 = vpop.f32.mrb[2].mxu1 }
 0x4c2   :  { %v463_v52 = vrot.slane %v458_v51, 6  ;;  %v1923_v53 = vpop.f32.mrb[3].mxu1 }
 0x4c4   :  { %v465_v54 = vadd.f32 %v463_v52, %v2572_v35 }
 0x4c6   :  { %2204 = vtanh.f32 %v465_v54 }
 0x4d0   :  { %v2205_v55 = vpop.eup %2204 }
 0x4d1   :  { %474 = vrot.lane.b32.xlu1 %v2205_v55, %s2383_s4  ;;  %v467_v56 = vmul.f32 0.5, %v2205_v55 }
 0x4d3   :  { %v468_v57 = vadd.f32 0.5, %v467_v56 }
 0x4d5   :  { %v472_v61 = vmul.f32 %v470_v60, %v468_v57 }
 0x543   :  { %v475_v58 = vpop.permute.xlu1 %474 }
 0x544   :  { %v477_v59 = vmul.f32 %v475_v58, %v468_v57 }
 0x546   :  { %479 = vrot.lane.b32.xlu0 %v477_v59, %s2384_s20 }
 0x5b8   :  { %v480_v62 = vpop.permute.xlu0 %479 }
 0x5b9   :  { %v482_v63 = vadd.f32 %v480_v62, %v472_v61 }
 0x5bb   :  { %2206 = vtanh.f32 %v482_v63  ;;  %v573_v16 = vrot.slane %v482_v63, 6 }
 0x5c5   :  { %v2207_v0 = vpop.eup %2206 }
 0x5c6   :  { %485 = vrot.lane.b32.xlu1 %v2207_v0, %s2383_s4 }
 0x638   :  { %v486_v1 = vpop.permute.xlu1 %485 }
 0x639   :  { %v488_v2 = vmul.f32 %v486_v1, %v468_v57 }
 0x63b   :  { %v490_v3 = vrot.slane %v488_v2, 2 }
 0x63d   :  { %491 = vrot.lane.b32.xlu0 %v490_v3, %s2384_s20 }
 0x6af   :  { %v2595_v4 = vpop.permute.xlu0 %491 }
 0x6b0   :  { %1933 = vmatmul.mubr.msk.f32.vlgmr.msra.gmra.mrb[4].mxu0 %vm201_vm1, %v2595_v4 }
 0x6b1   :  { %2116 = vmatpush3.bf16.msra.mxu0 %v2525_v10  ;;  %1954 = vmatprep.mubr.msk.f32.mxu0 %vm2381_vm2, %v2382_v19 }
 0x6b2   :  { %2117 = vmatprep.subr.bf16.mxu0 %v2380_v13 }
 0x6b5   :  { %2119 = vmatpush3.bf16.msra.mxu0 %v2542_v17 }
 0x6b6   :  { %2126 = vmatprep.subr.bf16.mxu0 %v2380_v13 }
 0x783   :  { %v561_v5 = vpop.f32.mrb[4].mxu0 }
 0x784   :  { %v566_v6 = vrot.slane %v561_v5, 4  ;;  %v1934_v7 = vpop.f32.mrb[5].mxu0 }
 0x786   :  { %v568_v8 = vadd.f32 %v566_v6, %v2572_v35 }
 0x788   :  { %2208 = vtanh.f32 %v568_v8 }
 0x792   :  { %v2209_v9 = vpop.eup %2208 }
 0x793   :  { %577 = vrot.lane.b32.xlu1 %v2209_v9, %s2383_s4  ;;  %v570_v11 = vmul.f32 0.5, %v2209_v9 }
 0x795   :  { %v571_v12 = vadd.f32 0.5, %v570_v11 }
 0x797   :  { %v575_v18 = vmul.f32 %v573_v16, %v571_v12 }
 0x805   :  { %v578_v14 = vpop.permute.xlu1 %577 }
 0x806   :  { %v580_v15 = vmul.f32 %v578_v14, %v571_v12 }
 0x808   :  { %582 = vrot.lane.b32.xlu0 %v580_v15, %s2384_s20 }
 0x87a   :  { %v583_v20 = vpop.permute.xlu0 %582 }
 0x87b   :  { %v585_v21 = vadd.f32 %v583_v20, %v575_v18  ;;  %v1103_v18 = vld [vmem:[#allocation8] sm:$0xff]  ;;  %v1104_v20 = vld [vmem:[#allocation8 + $0x8] sm:$0xff] }
 0x87d   :  { %2210 = vtanh.f32 %v585_v21  ;;  %v676_v38 = vrot.slane %v585_v21, 6  ;;  %v2655_v21 = vpack.c.bf16 %v1104_v20, %v1103_v18 }
 0x887   :  { %v2211_v22 = vpop.eup %2210 }
 0x888   :  { %588 = vrot.lane.b32.xlu1 %v2211_v22, %s2383_s4  ;;  %v1105_v22 = vld [vmem:[#allocation8 + $0x10] sm:$0xff] }
 0x8fa   :  { %v589_v23 = vpop.permute.xlu1 %588 }
 0x8fb   :  { %v591_v24 = vmul.f32 %v589_v23, %v571_v12  ;;  %v1106_v23 = vld [vmem:[#allocation8 + $0x18] sm:$0xff] }
 0x8fd   :  { %v593_v25 = vrot.slane %v591_v24, 4 }
 0x8ff   :  { %594 = vrot.lane.b32.xlu0 %v593_v25, %s2384_s20  ;;  %v2662_v25 = vpack.c.bf16 %v1106_v23, %v1105_v22 }
 0x971   :  { %v2610_v26 = vpop.permute.xlu0 %594 }
 0x972   :  { %1944 = vmatmul.mubr.msk.f32.vlgmr.msra.gmra.mrb[4].mxu1 %vm201_vm1, %v2610_v26 }
 0x973   :  { %2122 = vmatpush3.bf16.msra.mxu1 %v2525_v10  ;;  %1965 = vmatprep.mubr.msk.f32.mxu1 %vm2381_vm2, %v2382_v19 }
 0x974   :  { %2123 = vmatprep.subr.bf16.mxu1 %v2380_v13 }
 0x977   :  { %2125 = vmatpush3.bf16.msra.mxu1 %v2542_v17 }
 0x978   :  { %2132 = vmatprep.subr.bf16.mxu1 %v2380_v13 }
 0xa45   :  { %v664_v27 = vpop.f32.mrb[4].mxu1 }
 0xa46   :  { %v669_v28 = vrot.slane %v664_v27, 2  ;;  %v1945_v29 = vpop.f32.mrb[5].mxu1 }
 0xa47   :  { %v2695_v29 = vld [vmem:[%s2809_s9] ss:$0 sm:$0xff] }
 0xa48   :  { %v671_v30 = vadd.f32 %v669_v28, %v2572_v35 }
 0xa4a   :  { %2212 = vtanh.f32 %v671_v30 }
 0xa54   :  { %v2213_v31 = vpop.eup %2212 }
 0xa55   :  { %680 = vrot.lane.b32.xlu1 %v2213_v31, %s2383_s4  ;;  %v673_v32 = vmul.f32 0.5, %v2213_v31 }
 0xa57   :  { %v674_v34 = vadd.f32 0.5, %v673_v32 }
 0xa59   :  { %v678_v39 = vmul.f32 %v676_v38, %v674_v34 }
 0xac7   :  { %v681_v36 = vpop.permute.xlu1 %680 }
 0xac8   :  { %v683_v37 = vmul.f32 %v681_v36, %v674_v34 }
 0xaca   :  { %685 = vrot.lane.b32.xlu0 %v683_v37, %s2384_s20 }
 0xb3c   :  { %v686_v40 = vpop.permute.xlu0 %685 }
 0xb3d   :  { %v688_v41 = vadd.f32 %v686_v40, %v678_v39 }
 0xb3f   :  { %2214 = vtanh.f32 %v688_v41  ;;  %v776_v55 = vrot.slane %v688_v41, 6 }
 0xb49   :  { %v2215_v42 = vpop.eup %2214 }
 0xb4a   :  { %691 = vrot.lane.b32.xlu1 %v2215_v42, %s2383_s4 }
 0xbbc   :  { %v692_v43 = vpop.permute.xlu1 %691 }
 0xbbd   :  { %v694_v35 = vmul.f32 %v692_v43, %v674_v34 }
 0xbbf   :  { %v696_v44 = vrot.slane %v694_v35, 6 }
 0xbc1   :  { %697 = vrot.lane.b32.xlu0 %v696_v44, %s2384_s20 }
 0xc33   :  { %v2625_v45 = vpop.permute.xlu0 %697 }
 0xc34   :  { %1955 = vmatmul.mubr.msk.f32.vlgmr.msra.gmra.mrb[6].mxu0 %vm201_vm1, %v2625_v45 }
 0xc35   :  { %2128 = vmatpush3.bf16.msra.mxu0 %v2525_v10  ;;  %1976 = vmatprep.mubr.msk.f32.mxu0 %vm2381_vm2, %v2382_v19 }
 0xc36   :  { %2129 = vmatprep.subr.bf16.mxu0 %v2380_v13 }
 0xc39   :  { %2131 = vmatpush3.bf16.msra.mxu0 %v2542_v17 }
 0xc3a   :  { %2138 = vmatprep.subr.bf16.mxu0 %v2380_v13 }
 0xd07   :  { %v767_v46 = vpop.f32.mrb[6].mxu0 }
 0xd08   :  { %v771_v47 = vadd.f32 %v767_v46, %v2570_v33  ;;  %v1956_v48 = vpop.f32.mrb[7].mxu0 }
 0xd0a   :  { %2216 = vtanh.f32 %v771_v47 }
 0xd14   :  { %v2217_v49 = vpop.eup %2216 }
 0xd15   :  { %780 = vrot.lane.b32.xlu1 %v2217_v49, %s2383_s4  ;;  %v773_v51 = vmul.f32 0.5, %v2217_v49 }
 0xd17   :  { %v774_v52 = vadd.f32 0.5, %v773_v51 }
 0xd19   :  { %v778_v56 = vmul.f32 %v776_v55, %v774_v52 }
 0xd87   :  { %v781_v53 = vpop.permute.xlu1 %780 }
 0xd88   :  { %v783_v54 = vmul.f32 %v781_v53, %v774_v52 }
 0xd8a   :  { %785 = vrot.lane.b32.xlu0 %v783_v54, %s2384_s20 }
 0xdfc   :  { %v786_v57 = vpop.permute.xlu0 %785 }
 0xdfd   :  { %v788_v58 = vadd.f32 %v786_v57, %v778_v56 }
 0xdff   :  { %2218 = vtanh.f32 %v788_v58  ;;  %v878_v8 = vrot.slane %v788_v58, 6 }
 0xe09   :  { %v2219_v59 = vpop.eup %2218 }
 0xe0a   :  { %791 = vrot.lane.b32.xlu1 %v2219_v59, %s2383_s4 }
 0xe7c   :  { %v792_v60 = vpop.permute.xlu1 %791 }
 0xe7d   :  { %v794_v61 = vmul.f32 %v792_v60, %v774_v52 }
 0xe7f   :  { %796 = vrot.lane.b32.xlu0 %v794_v61, %s2384_s20 }
 0xef1   :  { %v797_v62 = vpop.permute.xlu0 %796 }
 0xef2   :  { %1966 = vmatmul.mubr.msk.f32.vlgmr.msra.gmra.mrb[6].mxu1 %vm201_vm1, %v797_v62 }
 0xef3   :  { %2134 = vmatpush3.bf16.msra.mxu1 %v2525_v10  ;;  %1987 = vmatprep.mubr.msk.f32.mxu1 %vm2381_vm2, %v2382_v19 }
 0xef4   :  { %2135 = vmatprep.subr.bf16.mxu1 %v2380_v13 }
 0xef7   :  { %2137 = vmatpush3.bf16.msra.mxu1 %v2542_v17 }
 0xef8   :  { %2144 = vmatprep.subr.bf16.mxu1 %v2380_v13 }
 0xfc5   :  { %v866_v63 = vpop.f32.mrb[6].mxu1 }
 0xfc6   :  { %v871_v0 = vrot.slane %v866_v63, 6  ;;  %v1967_v1 = vpop.f32.mrb[7].mxu1 }
 0xfc8   :  { %v873_v2 = vadd.f32 %v871_v0, %v2570_v33 }
 0xfca   :  { %2220 = vtanh.f32 %v873_v2 }
 0xfd4   :  { %v2221_v3 = vpop.eup %2220 }
 0xfd5   :  { %882 = vrot.lane.b32.xlu1 %v2221_v3, %s2383_s4  ;;  %v875_v5 = vmul.f32 0.5, %v2221_v3 }
 0xfd7   :  { %v876_v10 = vadd.f32 0.5, %v875_v5 }
 0xfd9   :  { %v880_v9 = vmul.f32 %v878_v8, %v876_v10 }
0x1047   :  { %v883_v6 = vpop.permute.xlu1 %882 }
0x1048   :  { %v885_v7 = vmul.f32 %v883_v6, %v876_v10 }
0x104a   :  { %887 = vrot.lane.b32.xlu0 %v885_v7, %s2384_s20 }
0x10bc   :  { %v888_v17 = vpop.permute.xlu0 %887 }
0x10bd   :  { %v2650_v11 = vadd.f32 %v888_v17, %v880_v9 }
0x10bf   :  { %2222 = vtanh.f32 %v2650_v11  ;;  %v981_v53 = vrot.slane %v2650_v11, 6 }
0x10c9   :  { %v2223_v12 = vpop.eup %2222 }
0x10ca   :  { %893 = vrot.lane.b32.xlu1 %v2223_v12, %s2383_s4 }
0x113c   :  { %v894_v14 = vpop.permute.xlu1 %893 }
0x113d   :  { %v896_v15 = vmul.f32 %v894_v14, %v876_v10 }
0x113f   :  { %v898_v16 = vrot.slane %v896_v15, 2 }
0x1141   :  { %899 = vrot.lane.b32.xlu0 %v898_v16, %s2384_s20 }
0x11b3   :  { %v2657_v24 = vpop.permute.xlu0 %899 }
0x11b4   :  { %1977 = vmatmul.mubr.msk.f32.vlgmr.msra.gmra.mrb[8].mxu0 %vm201_vm1, %v2657_v24 }
0x11b5   :  { %2140 = vmatpush3.bf16.msra.mxu0 %v2655_v21  ;;  %1998 = vmatprep.mubr.msk.f32.mxu0 %vm2381_vm2, %v2382_v19 }
0x11b6   :  { %2141 = vmatprep.subr.bf16.mxu0 %v2380_v13 }
0x11b9   :  { %2143 = vmatpush3.bf16.msra.mxu0 %v2662_v25 }
0x11ba   :  { %2150 = vmatprep.subr.bf16.mxu0 %v2380_v13 }
0x11bc   :  { %1999 = vmatmul.mubr.msk.f32.vlgmr.msra.gmra.mrb[10].mxu0 %vm201_vm1, %v2580_v50 }
0x11bd   :  { %2152 = vmatpush3.bf16.msra.mxu0 %v2655_v21  ;;  %2020 = vmatprep.mubr.msk.f32.mxu0 %vm2381_vm2, %v2382_v19 }
0x11be   :  { %2153 = vmatprep.subr.bf16.mxu0 %v2380_v13 }
0x11c1   :  { %2155 = vmatpush3.bf16.msra.mxu0 %v2662_v25 }
0x11c2   :  { %2162 = vmatprep.subr.bf16.mxu0 %v2380_v13 }
0x11c4   :  { %2021 = vmatmul.mubr.msk.f32.vlgmr.msra.gmra.mrb[12].mxu0 %vm201_vm1, %v2610_v26 }
0x11c5   :  { %2164 = vmatpush3.bf16.msra.mxu0 %v2655_v21  ;;  %2042 = vmatprep.mubr.msk.f32.mxu0 %vm2381_vm2, %v2382_v19 }
0x11c6   :  { %2165 = vmatprep.subr.bf16.mxu0 %v2380_v13 }
0x11c9   :  { %2167 = vmatpush3.bf16.msra.mxu0 %v2662_v25 }
0x11ca   :  { %2174 = vmatprep.subr.bf16.mxu0 %v2380_v13 }
0x11cc   :  { %2043 = vmatmul.mubr.msk.f32.vlgmr.msra.gmra.mrb[14].mxu0 %vm201_vm1, %v797_v62 }
0x11cd   :  { %2176 = vmatpush3.bf16.msra.mxu0 %v2655_v21  ;;  %2064 = vmatprep.mubr.msk.f32.mxu0 %vm2381_vm2, %v2382_v19 }
0x11ce   :  { %2177 = vmatprep.subr.bf16.mxu0 %v2380_v13 }
0x11d1   :  { %2179 = vmatpush3.bf16.msra.mxu0 %v2662_v25 }
0x1287   :  { %v969_v50 = vpop.f32.mrb[8].mxu0 }
0x1288   :  { %v974_v26 = vrot.slane %v969_v50, 4  ;;  %v1978_v27 = vpop.f32.mrb[9].mxu0 }
0x128a   :  { %v976_v28 = vadd.f32 %v974_v26, %v2570_v33 }
0x128c   :  { %2224 = vtanh.f32 %v976_v28 }
0x128f   :  { %v1180_v30 = vpop.f32.mrb[10].mxu0 }
0x1290   :  { %v1181_v31 = vadd.f32 %v2695_v29, %v1180_v30  ;;  %v2000_v32 = vpop.f32.mrb[11].mxu0 }
0x1292   :  { %vm1184_vm5 = vcmp.ge.f32.partialorder %v1181_v31, 0.0  ;;  %v1185_v34 = vmul.f32 0.01, %v1181_v31 }
0x1294   :  { %v1186_v36 = vsel %vm1184_vm5, %v1181_v31, %v1185_v34 }
0x1295   :  { %1187 = vst [vmem:[%s2810_s10] sm:$0x3] %v1186_v36 }
0x1296   :  { %v2225_v37 = vpop.eup %2224 }
0x1297   :  { %v1329_v38 = vpop.f32.mrb[12].mxu0  ;;  %985 = vrot.lane.b32.xlu1 %v2225_v37, %s2383_s4  ;;  %v978_v48 = vmul.f32 0.5, %v2225_v37 }
0x1298   :  { %v1330_v39 = vadd.f32 %v2695_v29, %v1329_v38  ;;  %v2022_v40 = vpop.f32.mrb[13].mxu0 }
0x1299   :  { %v979_v49 = vadd.f32 0.5, %v978_v48 }
0x129a   :  { %vm1333_vm6 = vcmp.ge.f32.partialorder %v1330_v39, 0.0  ;;  %v1334_v41 = vmul.f32 0.01, %v1330_v39 }
0x129b   :  { %v983_v54 = vmul.f32 %v981_v53, %v979_v49 }
0x129c   :  { %v1335_v42 = vsel %vm1333_vm6, %v1330_v39, %v1334_v41 }
0x129d   :  { %1783 = vst [vmem:[%s2810_s10 + $0x4] sm:$0x3] %v1335_v42 }
0x129f   :  { %v1479_v43 = vpop.f32.mrb[14].mxu0 }
0x12a0   :  { %v1480_v35 = vadd.f32 %v2695_v29, %v1479_v43  ;;  %v2044_v44 = vpop.f32.mrb[15].mxu0 }
0x12a2   :  { %vm1483_vm7 = vcmp.ge.f32.partialorder %v1480_v35, 0.0  ;;  %v1484_v46 = vmul.f32 0.01, %v1480_v35 }
0x12a4   :  { %v1485_v47 = vsel %vm1483_vm7, %v1480_v35, %v1484_v46 }
0x12a5   :  { %1787 = vst [vmem:[%s2810_s10 + $0x8] sm:$0x3] %v1485_v47 }
0x1309   :  { %v986_v51 = vpop.permute.xlu1 %985 }
0x130a   :  { %v988_v52 = vmul.f32 %v986_v51, %v979_v49 }
0x130c   :  { %990 = vrot.lane.b32.xlu0 %v988_v52, %s2384_s20 }
0x137e   :  { %v991_v55 = vpop.permute.xlu0 %990 }
0x137f   :  { %v2712_v56 = vadd.f32 %v991_v55, %v983_v54 }
0x1381   :  { %2226 = vtanh.f32 %v2712_v56 }
0x138b   :  { %v2227_v57 = vpop.eup %2226 }
0x138c   :  { %996 = vrot.lane.b32.xlu1 %v2227_v57, %s2383_s4 }
0x13fe   :  { %v997_v58 = vpop.permute.xlu1 %996 }
0x13ff   :  { %v999_v59 = vmul.f32 %v997_v58, %v979_v49 }
0x1401   :  { %v1001_v60 = vrot.slane %v999_v59, 4 }
0x1403   :  { %1002 = vrot.lane.b32.xlu0 %v1001_v60, %s2384_s20 }
0x1475   :  { %v1003_v61 = vpop.permute.xlu0 %1002 }
0x1476   :  { %1988 = vmatmul.mubr.msk.f32.vlgmr.msra.gmra.mrb[8].mxu1 %vm201_vm1, %v1003_v61  ;;  %2065 = vmatmul.mubr.msk.f32.vlgmr.msra.gmra.mrb[16].mxu0 %vm201_vm1, %v1003_v61 }
0x1477   :  { %2146 = vmatpush3.bf16.msra.mxu1 %v2655_v21  ;;  %2009 = vmatprep.mubr.msk.f32.mxu1 %vm2381_vm2, %v2382_v19 }
0x1478   :  { %2147 = vmatprep.subr.bf16.mxu1 %v2380_v13 }
0x147b   :  { %2149 = vmatpush3.bf16.msra.mxu1 %v2662_v25 }
0x147c   :  { %2156 = vmatprep.subr.bf16.mxu1 %v2380_v13 }
0x147e   :  { %2010 = vmatmul.mubr.msk.f32.vlgmr.msra.gmra.mrb[10].mxu1 %vm201_vm1, %v2595_v4 }
0x147f   :  { %2158 = vmatpush3.bf16.msra.mxu1 %v2655_v21  ;;  %2031 = vmatprep.mubr.msk.f32.mxu1 %vm2381_vm2, %v2382_v19 }
0x1480   :  { %2159 = vmatprep.subr.bf16.mxu1 %v2380_v13 }
0x1483   :  { %2161 = vmatpush3.bf16.msra.mxu1 %v2662_v25 }
0x1484   :  { %2168 = vmatprep.subr.bf16.mxu1 %v2380_v13 }
0x1486   :  { %2032 = vmatmul.mubr.msk.f32.vlgmr.msra.gmra.mrb[12].mxu1 %vm201_vm1, %v2625_v45 }
0x1487   :  { %2170 = vmatpush3.bf16.msra.mxu1 %v2655_v21  ;;  %2053 = vmatprep.mubr.msk.f32.mxu1 %vm2381_vm2, %v2382_v19 }
0x1488   :  { %2171 = vmatprep.subr.bf16.mxu1 %v2380_v13 }
0x148b   :  { %2173 = vmatpush3.bf16.msra.mxu1 %v2662_v25 }
0x148c   :  { %2180 = vmatprep.subr.bf16.mxu1 %v2380_v13 }
0x148e   :  { %2054 = vmatmul.mubr.msk.f32.vlgmr.msra.gmra.mrb[14].mxu1 %vm201_vm1, %v2657_v24 }
0x148f   :  { %2182 = vmatpush3.bf16.msra.mxu1 %v2655_v21  ;;  %2075 = vmatprep.mubr.msk.f32.mxu1 %vm2381_vm2, %v2382_v19 }
0x1490   :  { %2183 = vmatprep.subr.bf16.mxu1 %v2380_v13 }
0x1493   :  { %2185 = vmatpush3.bf16.msra.mxu1 %v2662_v25  ;;  %v1084_v25 = vrot.slane %v2712_v56, 6 }
0x1549   :  { %v1072_v4 = vpop.f32.mrb[8].mxu1  ;;  %v1629_v45 = vpop.f32.mrb[16].mxu0 }
0x154a   :  { %v1077_v62 = vrot.slane %v1072_v4, 2  ;;  %v1630_v63 = vadd.f32 %v2695_v29, %v1629_v45  ;;  %v1989_v0 = vpop.f32.mrb[9].mxu1  ;;  %v2066_v1 = vpop.f32.mrb[17].mxu0 }
0x154c   :  { %v1079_v2 = vadd.f32 %v1077_v62, %v2570_v33  ;;  %vm1633_vm8 = vcmp.ge.f32.partialorder %v1630_v63, 0.0  ;;  %v1634_v3 = vmul.f32 0.01, %v1630_v63 }
0x154e   :  { %2228 = vtanh.f32 %v1079_v2  ;;  %v1635_v5 = vsel %vm1633_vm8, %v1630_v63, %v1634_v3 }
0x154f   :  { %1791 = vst [vmem:[%s2810_s10 + $0xc] sm:$0x3] %v1635_v5 }
0x1551   :  { %v1254_v13 = vpop.f32.mrb[10].mxu1 }
0x1552   :  { %v1255_v19 = vadd.f32 %v2695_v29, %v1254_v13  ;;  %v2011_v10 = vpop.f32.mrb[11].mxu1 }
0x1554   :  { %vm1258_vm9 = vcmp.ge.f32.partialorder %v1255_v19, 0.0  ;;  %v1259_v6 = vmul.f32 0.01, %v1255_v19 }
0x1556   :  { %v1260_v7 = vsel %vm1258_vm9, %v1255_v19, %v1259_v6 }
0x1557   :  { %1781 = vst [vmem:[%s2810_s10 + $0x2] sm:$0x3] %v1260_v7 }
0x1558   :  { %v2229_v33 = vpop.eup %2228 }
0x1559   :  { %v1404_v8 = vpop.f32.mrb[12].mxu1  ;;  %1088 = vrot.lane.b32.xlu1 %v2229_v33, %s2383_s4  ;;  %v1081_v21 = vmul.f32 0.5, %v2229_v33 }
0x155a   :  { %v1405_v9 = vadd.f32 %v2695_v29, %v1404_v8  ;;  %v2033_v17 = vpop.f32.mrb[13].mxu1 }
0x155b   :  { %v1082_v22 = vadd.f32 0.5, %v1081_v21 }
0x155c   :  { %vm1408_vm10 = vcmp.ge.f32.partialorder %v1405_v9, 0.0  ;;  %v1409_v11 = vmul.f32 0.01, %v1405_v9 }
0x155d   :  { %v1086_v50 = vmul.f32 %v1084_v25, %v1082_v22 }
0x155e   :  { %v1410_v12 = vsel %vm1408_vm10, %v1405_v9, %v1409_v11 }
0x155f   :  { %1785 = vst [vmem:[%s2810_s10 + $0x6] sm:$0x3] %v1410_v12 }
0x1561   :  { %v1554_v14 = vpop.f32.mrb[14].mxu1 }
0x1562   :  { %v1555_v15 = vadd.f32 %v2695_v29, %v1554_v14  ;;  %v2055_v16 = vpop.f32.mrb[15].mxu1 }
0x1564   :  { %vm1558_vm11 = vcmp.ge.f32.partialorder %v1555_v15, 0.0  ;;  %v1559_v18 = vmul.f32 0.01, %v1555_v15 }
0x1566   :  { %v1560_v20 = vsel %vm1558_vm11, %v1555_v15, %v1559_v18 }
0x1567   :  { %1789 = vst [vmem:[%s2810_s10 + $0xa] sm:$0x3] %v1560_v20 }
0x15cb   :  { %v1089_v23 = vpop.permute.xlu1 %1088 }
0x15cc   :  { %v1091_v24 = vmul.f32 %v1089_v23, %v1082_v22 }
0x15ce   :  { %1093 = vrot.lane.b32.xlu0 %v1091_v24, %s2384_s20 }
0x1640   :  { %v1094_v26 = vpop.permute.xlu0 %1093 }
0x1641   :  { %v1096_v27 = vadd.f32 %v1094_v26, %v1086_v50 }
0x1643   :  { %2230 = vtanh.f32 %v1096_v27 }
0x164d   :  { %v2231_v28 = vpop.eup %2230 }
0x164e   :  { %1099 = vrot.lane.b32.xlu1 %v2231_v28, %s2383_s4 }
0x16c0   :  { %v1100_v30 = vpop.permute.xlu1 %1099 }
0x16c1   :  { %v1102_v31 = vmul.f32 %v1100_v30, %v1082_v22 }
0x16c3   :  { %v1639_v32 = vrot.slane %v1102_v31, 6  ;;  %1719 = vrot.lane.b32.xlu1 %v1102_v31, %s2384_s20 }
0x16c5   :  { %1640 = vrot.lane.b32.xlu0 %v1639_v32, %s2384_s20 }
0x16c9   :  { %1725 = vrot.lane.b32.xlu0 %v1096_v27, %s2385_s3 }
0x1735   :  { %v1720_v34 = vpop.permute.xlu1 %1719 }
0x1736   :  { %1723 = vst.msk [vmem:[#allocation10 - $0x6] sm:$0xc0] %vm1722_vm12, %v1720_v34 }
0x1737   :  { %v1641_v36 = vpop.permute.xlu0 %1640 }
0x1738   :  { %2076 = vmatmul.mubr.msk.f32.vlgmr.msra.gmra.mrb[16].mxu1 %vm201_vm1, %v1641_v36 }
0x173b   :  { %v1726_v37 = vpop.permute.xlu0 %1725 }
0x173c   :  { %1728 = vst.msk [vmem:[#allocation11 - $0x6] sm:$0xc0] %vm1722_vm12, %v1726_v37 }
0x173d   :  { %2331 = shalt.err (!%p2328_p8)
}
0x173e   :  { %s2332_s1 = scalar_lea.hbm %s2811_s11, 32 }
0x173f   :  { %p2333_p9 = scmp.ne.s32.totalorder %s2811_s11, %s2332_s1  ;;  %p2336_p10 = scmp.lt.u32.totalorder %s2332_s1, %s2811_s11 }
0x1741   :  { %p2338_p11 = pnand %p2336_p10, %p2333_p9 }
0x1743   :  { %2341 = shalt.err (!%p2338_p11)
}
0x1744   :  { %1740 = dma.vmem_to_hbm [thread:$0]  %s1738_s29, 32, %s2811_s11, [#allocation4]  }
0x1745   :  { %s2342_s23 = scalar_lea.vmem %s1748_s15, 32  ;;  %p2347_p13 = scmp.lt.s32.totalorder %s1748_s15, %s1748_s15 }
0x1746   :  { %p2343_p12 = scmp.ne.s32.totalorder %s1748_s15, %s2342_s23  ;;  %p2348_p0 = scmp.lt.s32.totalorder %s2342_s23, %s2342_s23 }
0x1748   :  { %p2349_p1 = por %p2348_p0, %p2347_p13 }
0x174a   :  { %p2350_p2 = pnand %p2349_p1, %p2343_p12 }
0x174c   :  { %2353 = shalt.err (!%p2350_p2)
}
0x174d   :  { %s2354_s8 = scalar_lea.hbm %s2812_s12, 32 }
0x174e   :  { %p2355_p3 = scmp.ne.s32.totalorder %s2812_s12, %s2354_s8  ;;  %p2358_p4 = scmp.lt.u32.totalorder %s2354_s8, %s2812_s12 }
0x1750   :  { %p2360_p5 = pnand %p2358_p4, %p2355_p3 }
0x1752   :  { %2363 = shalt.err (!%p2360_p5)
}
0x1753   :  { %1750 = dma.vmem_to_hbm [thread:$0]  %s1748_s15, 32, %s2812_s12, [#allocation12]  }
0x180b   :  { %v1710_v38 = vpop.f32.mrb[16].mxu1 }
0x180c   :  { %v1711_v39 = vadd.f32 %v2695_v29, %v1710_v38  ;;  %v2077_v40 = vpop.f32.mrb[17].mxu1 }
0x180e   :  { %vm1714_vm13 = vcmp.ge.f32.partialorder %v1711_v39, 0.0  ;;  %v1715_v41 = vmul.f32 0.01, %v1711_v39 }
0x1810   :  { %v1716_v42 = vsel %vm1714_vm13, %v1711_v39, %v1715_v41 }
0x1811   :  { %1793 = vst [vmem:[%s2810_s10 + $0xe] sm:$0x3] %v1716_v42 }
0x1812   :  { %2370 = dma.done.wait [#allocation4], 32  }
0x1813   :  { %2371 = vsyncadd [#allocation4], 4294967264 }
0x1814   :  { %2372 = dma.done.wait [#allocation12], 32  }
0x1815   :  { %2373 = vsyncadd [#allocation12], 4294967264 }
0x1816   :  { %1759 = vsyncpa [#allocation3], 1 }
0x1817   :  { %1760 = vsyncpa [#allocation6], 1 }
0x1818   :  { %1761 = vsyncpa [#allocation9], 1 }
0x1819   :  { %1762 = vsyncpa [#allocation4], 1 }
0x181a   :  { %1763 = vsyncpa [#allocation12], 1 }

</bundles_post_ra>
